<compile_context>
chip_gen: v6e
topology: v6e:2x2x1
jax: 0.10.0
libtpu: 0.0.40
codegen_flags: <defaults>
</compile_context>

<pallas_src>
import jax
import jax.numpy as jnp
from jax.experimental import pallas as pl
from jax.experimental.pallas import tpu as pltpu

N = 1000          # hidden width fixed by the module
N_PAD = 1024      # padded hidden width (multiple of 128 -> lane-dense tiles)
Z_DIM = 8         # args.z_dim (small, chosen for the example)
BATCH = 8


def d_net_gauss_kernel(x_ref, w1_ref, b1_ref, w2_ref, b2_ref, w3_ref, b3_ref, out_ref):
    # Single step: everything (x, all weights/biases, output) is VMEM-resident.
    # Dropout (p=0.2) is identity in eval mode -> omitted.
    xb = x_ref[...].astype(jnp.bfloat16)

    # layer 1: (B, z) @ (z, N_PAD) + b1, relu
    h1 = jnp.dot(xb, w1_ref[...], preferred_element_type=jnp.float32) + b1_ref[...]
    h1 = jnp.maximum(h1, 0.0)

    # layer 2: (B, N_PAD) @ (N_PAD, N_PAD) + b2, relu
    h2 = jnp.dot(h1.astype(jnp.bfloat16), w2_ref[...],
                 preferred_element_type=jnp.float32) + b2_ref[...]
    h2 = jnp.maximum(h2, 0.0)

    # layer 3 + fused bias + sigmoid: (B, N_PAD) @ (N_PAD, 1) + b3
    logit = jnp.dot(h2.astype(jnp.bfloat16), w3_ref[...],
                    preferred_element_type=jnp.float32) + b3_ref[...]
    out_ref[...] = 1.0 / (1.0 + jnp.exp(-logit))


def d_net_gauss(x, w1p, b1p, w2p, b2p, w3p, b3):
    """x: (B, z_dim) f32.  w*p: bf16 padded weights, b*p/b3: f32 biases."""
    B = x.shape[0]
    vmem = pl.BlockSpec(memory_space=pltpu.MemorySpace.VMEM)
    return pl.pallas_call(
        d_net_gauss_kernel,
        out_shape=jax.ShapeDtypeStruct((B, 1), jnp.float32),
        in_specs=[vmem] * 7,
        out_specs=vmem,
    )(x, w1p, b1p, w2p, b2p, w3p, b3)


def init_params(key, z_dim, n):
    """PyTorch nn.Linear default init: U(-1/sqrt(fan_in), 1/sqrt(fan_in)); W as (in, out)."""
    ks = jax.random.split(key, 6)

    def lin(kw, kb, fan_in, fan_out):
        bound = 1.0 / jnp.sqrt(jnp.float32(fan_in))
        w = jax.random.uniform(kw, (fan_in, fan_out), jnp.float32, -bound, bound)
        b = jax.random.uniform(kb, (1, fan_out), jnp.float32, -bound, bound)
        return w, b

    w1, b1 = lin(ks[0], ks[1], z_dim, n)
    w2, b2 = lin(ks[2], ks[3], n, n)
    w3, b3 = lin(ks[4], ks[5], n, 1)
    return w1, b1, w2, b2, w3, b3


def prepare_params(w1, b1, w2, b2, w3, b3, n_pad):
    """Zero-pad hidden width to n_pad and cast weights to bf16 (biases stay f32)."""
    n = w2.shape[0]
    p = n_pad - n
    w1p = jnp.pad(w1, ((0, 0), (0, p))).astype(jnp.bfloat16)
    b1p = jnp.pad(b1, ((0, 0), (0, p)))
    w2p = jnp.pad(w2, ((0, p), (0, p))).astype(jnp.bfloat16)
    b2p = jnp.pad(b2, ((0, 0), (0, p)))
    w3p = jnp.pad(w3, ((0, p), (0, 0))).astype(jnp.bfloat16)
    if p:
        # Padded bias entries must be exactly 0 so padded hidden columns stay 0 through ReLU.
        assert float(jnp.max(jnp.abs(b1p[:, n:]))) == 0.0
        assert float(jnp.max(jnp.abs(b2p[:, n:]))) == 0.0
    return w1p, b1p, w2p, b2p, w3p, b3


def reference_forward(x, w1p, b1p, w2p, b2p, w3p, b3):
    """Same bf16-weight / f32-accumulate math as the kernel, in plain JAX."""
    xb = x.astype(jnp.bfloat16)
    h1 = jnp.maximum(jnp.dot(xb, w1p, preferred_element_type=jnp.float32) + b1p, 0.0)
    h2 = jnp.maximum(
        jnp.dot(h1.astype(jnp.bfloat16), w2p, preferred_element_type=jnp.float32) + b2p, 0.0)
    logit = jnp.dot(h2.astype(jnp.bfloat16), w3p, preferred_element_type=jnp.float32) + b3
    return 1.0 / (1.0 + jnp.exp(-logit))


if __name__ == "__main__":
    key = jax.random.PRNGKey(0)
    k_x, k_p = jax.random.split(key)

    x = jax.random.normal(k_x, (BATCH, Z_DIM), jnp.float32)
    params = init_params(k_p, Z_DIM, N)
    w1p, b1p, w2p, b2p, w3p, b3 = prepare_params(*params, n_pad=N_PAD)

    out = d_net_gauss(x, w1p, b1p, w2p, b2p, w3p, b3)
    out = jax.block_until_ready(out)
    assert out.shape == (BATCH, 1)

    # Strict check against the bf16-matched reference (only f32 accumulation order differs).
    ref = reference_forward(x, w1p, b1p, w2p, b2p, w3p, b3)
    assert jnp.allclose(out, ref, atol=1e-3, rtol=1e-3), float(jnp.max(jnp.abs(out - ref)))

    # Loose sanity check against the original full-f32, unpadded PyTorch-equivalent math.
    w1, b1, w2, b2, w3, b3f = params
    h1 = jnp.maximum(x @ w1 + b1, 0.0)
    h2 = jnp.maximum(h1 @ w2 + b2, 0.0)
    ref32 = jax.nn.sigmoid(h2 @ w3 + b3f)
    assert jnp.allclose(out, ref32, atol=5e-2), float(jnp.max(jnp.abs(out - ref32)))

    print("KERNEL_OK")
</pallas_src>

<mosaic_0001>
module attributes {stable_mosaic.version = 11 : i64} {
  func.func @d_net_gauss_kernel(%arg0: memref<8x8xf32, #tpu.memory_space<vmem>>, %arg1: memref<8x1024xbf16, #tpu.memory_space<vmem>>, %arg2: memref<1x1024xf32, #tpu.memory_space<vmem>>, %arg3: memref<1024x1024xbf16, #tpu.memory_space<vmem>>, %arg4: memref<1x1024xf32, #tpu.memory_space<vmem>>, %arg5: memref<1024x1xbf16, #tpu.memory_space<vmem>>, %arg6: memref<1x1xf32, #tpu.memory_space<vmem>>, %arg7: memref<8x1xf32, #tpu.memory_space<vmem>>) attributes {dimension_semantics = [], scalar_prefetch = 0 : i64, scratch_operands = 0 : i64, tpu.core_type = #tpu.core_type<tc>} {
    %c0 = arith.constant 0 : index
    %c0_0 = arith.constant 0 : index
    %0 = vector.load %arg0[%c0, %c0_0] : memref<8x8xf32, #tpu.memory_space<vmem>>, vector<8x8xf32>
    %1 = arith.truncf %0 : vector<8x8xf32> to vector<8x8xbf16>
    %c0_1 = arith.constant 0 : index
    %c0_2 = arith.constant 0 : index
    %2 = vector.load %arg1[%c0_1, %c0_2] : memref<8x1024xbf16, #tpu.memory_space<vmem>>, vector<8x1024xbf16>
    %cst = arith.constant dense<0.000000e+00> : vector<8x1024xf32>
    %3 = tpu.matmul %1, %2, %cst {dimension_numbers = #tpu.dot_dimension_numbers<[1], [0], [0], [1], [0, 0, 1, 1], [], []>} : vector<8x8xbf16>, vector<8x1024xbf16>, vector<8x1024xf32> -> vector<8x1024xf32>
    %c0_3 = arith.constant 0 : index
    %c0_4 = arith.constant 0 : index
    %4 = vector.load %arg2[%c0_3, %c0_4] : memref<1x1024xf32, #tpu.memory_space<vmem>>, vector<1x1024xf32>
    %5 = vector.broadcast %4 : vector<1x1024xf32> to vector<8x1024xf32>
    %6 = arith.addf %3, %5 : vector<8x1024xf32>
    %cst_5 = arith.constant 0.000000e+00 : f32
    %7 = vector.broadcast %cst_5 : f32 to vector<8x1024xf32>
    %8 = arith.maximumf %6, %7 : vector<8x1024xf32>
    %9 = arith.truncf %8 : vector<8x1024xf32> to vector<8x1024xbf16>
    %c0_6 = arith.constant 0 : index
    %c0_7 = arith.constant 0 : index
    %10 = vector.load %arg3[%c0_6, %c0_7] : memref<1024x1024xbf16, #tpu.memory_space<vmem>>, vector<1024x1024xbf16>
    %cst_8 = arith.constant dense<0.000000e+00> : vector<8x1024xf32>
    %11 = tpu.matmul %9, %10, %cst_8 {dimension_numbers = #tpu.dot_dimension_numbers<[1], [0], [0], [1], [0, 0, 1, 1], [], []>} : vector<8x1024xbf16>, vector<1024x1024xbf16>, vector<8x1024xf32> -> vector<8x1024xf32>
    %c0_9 = arith.constant 0 : index
    %c0_10 = arith.constant 0 : index
    %12 = vector.load %arg4[%c0_9, %c0_10] : memref<1x1024xf32, #tpu.memory_space<vmem>>, vector<1x1024xf32>
    %13 = vector.broadcast %12 : vector<1x1024xf32> to vector<8x1024xf32>
    %14 = arith.addf %11, %13 : vector<8x1024xf32>
    %cst_11 = arith.constant 0.000000e+00 : f32
    %15 = vector.broadcast %cst_11 : f32 to vector<8x1024xf32>
    %16 = arith.maximumf %14, %15 : vector<8x1024xf32>
    %17 = arith.truncf %16 : vector<8x1024xf32> to vector<8x1024xbf16>
    %c0_12 = arith.constant 0 : index
    %c0_13 = arith.constant 0 : index
    %18 = vector.load %arg5[%c0_12, %c0_13] : memref<1024x1xbf16, #tpu.memory_space<vmem>>, vector<1024x1xbf16>
    %cst_14 = arith.constant dense<0.000000e+00> : vector<8x1xf32>
    %19 = tpu.matmul %17, %18, %cst_14 {dimension_numbers = #tpu.dot_dimension_numbers<[1], [0], [0], [1], [0, 0, 1, 1], [], []>} : vector<8x1024xbf16>, vector<1024x1xbf16>, vector<8x1xf32> -> vector<8x1xf32>
    %c0_15 = arith.constant 0 : index
    %c0_16 = arith.constant 0 : index
    %20 = vector.load %arg6[%c0_15, %c0_16] : memref<1x1xf32, #tpu.memory_space<vmem>>, vector<1x1xf32>
    %21 = vector.broadcast %20 : vector<1x1xf32> to vector<8x1xf32>
    %22 = arith.addf %19, %21 : vector<8x1xf32>
    %cst_17 = arith.constant 0.000000e+00 : f32
    %23 = vector.broadcast %cst_17 : f32 to vector<8x1xf32>
    %24 = arith.subf %23, %22 : vector<8x1xf32>
    %25 = math.exp %24 : vector<8x1xf32>
    %cst_18 = arith.constant 1.000000e+00 : f32
    %26 = vector.broadcast %cst_18 : f32 to vector<8x1xf32>
    %27 = arith.addf %26, %25 : vector<8x1xf32>
    %cst_19 = arith.constant 1.000000e+00 : f32
    %28 = vector.broadcast %cst_19 : f32 to vector<8x1xf32>
    %29 = arith.divf %28, %27 : vector<8x1xf32>
    %c0_20 = arith.constant 0 : index
    %c0_21 = arith.constant 0 : index
    %30 = vector.load %arg7[%c0_20, %c0_21] : memref<8x1xf32, #tpu.memory_space<vmem>>, vector<8x1xf32>
    tpu.vector_store %arg7[%c0_20, %c0_21], %29 {strides = array<i32>} : memref<8x1xf32, #tpu.memory_space<vmem>>, vector<8x1xf32>,
    return
  }
}

</mosaic_0001>

<bundles_post_ra>
// kernel: tpu_custom_call.1
= control target key start
LH: loop header
LB: loop body
LE: loop exit
PB: predicated region body
PF: predicated region fallthrough
CT: control target
= control target key end

     0   :  { %s6154_s0 = inlined_call_operand.hbm [shape: f32[8,8], index: 0, kind: input, shape index: {}]   ;;  %s6155_s1 = inlined_call_operand.hbm [shape: bf16[8,1024], index: 1, kind: input, shape index: {}]   ;;  %s6156_s2 = inlined_call_operand.hbm [shape: f32[1,1024], index: 2, kind: input, shape index: {}]   ;;  %s6157_s3 = inlined_call_operand.hbm [shape: bf16[1024,1024], index: 3, kind: input, shape index: {}]   ;;  %s6158_s4 = inlined_call_operand.hbm [shape: f32[1,1024], index: 4, kind: input, shape index: {}]   ;;  %s6159_s5 = inlined_call_operand.vmem [shape: bf16[1024,1], index: 5, kind: input, shape index: {}]   ;;  %s6160_s6 = inlined_call_operand.<no memory space> [shape: f32[1,1], index: 6, kind: input, shape index: {}]   ;;  %s6161_s7 = inlined_call_operand.vmem [shape: f32[8,1], index: 7, kind: output, shape index: {}]  }
   0x1   :  { %v12_v0 = vstv %s6160_s6 }
   0x2   :  { %13 = vst [vmem:[#allocation2] sm:$0x1] %v12_v0 }
   0x3   :  { %14 = vsyncpa [#allocation4], 0 }
   0x4   :  { %15 = vsyncpa [#allocation6], 0 }
   0x5   :  { %16 = vsyncpa [#allocation9], 0  ;;  %s5718_s26 = smov [#allocation5]   ;;  %s5719_s28 = smov [#allocation8]  }
   0x6   :  { %s33_s27 = sshll.u32 %s5718_s26, 4  ;;  %s52_s29 = sshll.u32 %s5719_s28, 4  ;;  %s34_s27 = int_to_ptr.vmem [resolvable:$true] %s33_s27  ;;  %s53_s29 = int_to_ptr.vmem [resolvable:$true] %s52_s29 }
   0x7   :  { %s5620_s30 = scalar_lea.vmem %s34_s27, 512  ;;  %p5625_p1 = scmp.lt.s32.totalorder %s34_s27, %s34_s27 }
   0x8   :  { %p5621_p0 = scmp.ne.s32.totalorder %s34_s27, %s5620_s30  ;;  %p5626_p2 = scmp.lt.s32.totalorder %s5620_s30, %s5620_s30 }
   0xa   :  { %p5627_p3 = por %p5626_p2, %p5625_p1 }
   0xc   :  { %p5628_p4 = pnand %p5627_p3, %p5621_p0 }
   0xe   :  { %5631 = shalt.err (!%p5628_p4)
}
   0xf   :  { %36 = dma.hbm_to_vmem [thread:$0]  %s6155_s1, 512, %s34_s27, [#allocation6]  }
  0x10   :  { %s5640_s6 = scalar_lea.vmem %s53_s29, 65536  ;;  %p5645_p6 = scmp.lt.s32.totalorder %s53_s29, %s53_s29 }
  0x11   :  { %p5641_p5 = scmp.ne.s32.totalorder %s53_s29, %s5640_s6  ;;  %p5646_p7 = scmp.lt.s32.totalorder %s5640_s6, %s5640_s6 }
  0x13   :  { %p5647_p8 = por %p5646_p7, %p5645_p6 }
  0x15   :  { %p5648_p9 = pnand %p5647_p8, %p5641_p5 }
  0x17   :  { %5651 = shalt.err (!%p5648_p9)
}
  0x18   :  { %s5720_s10 = smov 512   ;;  %s5721_s11 = smov 32  }
  0x19   :  { %58 = dma.hbm_to_vmem [thread:$0]  %s6157_s3, 65536, %s53_s29, [#allocation9], %s5720_s10, %s5720_s10, %s5721_s11  }
  0x1a   :  { %s5722_s14 = smov [#allocation3]   ;;  %s5723_s16 = smov [#allocation7]  }
  0x1b   :  { %s23_s15 = sshll.u32 %s5722_s14, 4  ;;  %s43_s17 = sshll.u32 %s5723_s16, 4  ;;  %s24_s15 = int_to_ptr.vmem [resolvable:$true] %s23_s15  ;;  %s44_s17 = int_to_ptr.vmem [resolvable:$true] %s43_s17 }
  0x1c   :  { %s5660_s1 = scalar_lea.vmem %s24_s15, 128  ;;  %p5665_p11 = scmp.lt.s32.totalorder %s24_s15, %s24_s15 }
  0x1d   :  { %p5661_p10 = scmp.ne.s32.totalorder %s24_s15, %s5660_s1  ;;  %p5666_p12 = scmp.lt.s32.totalorder %s5660_s1, %s5660_s1 }
  0x1f   :  { %p5667_p13 = por %p5666_p12, %p5665_p11 }
  0x21   :  { %p5668_p0 = pnand %p5667_p13, %p5661_p10 }
  0x23   :  { %5671 = shalt.err (!%p5668_p0)
}
  0x24   :  { %26 = dma.hbm_to_vmem [thread:$0]  %s6154_s0, 128, %s24_s15, [#allocation4]  }
  0x25   :  { %s5680_s20 = scalar_lea.vmem %s44_s17, 128  ;;  %p5685_p2 = scmp.lt.s32.totalorder %s44_s17, %s44_s17 }
  0x26   :  { %p5681_p1 = scmp.ne.s32.totalorder %s44_s17, %s5680_s20  ;;  %p5686_p3 = scmp.lt.s32.totalorder %s5680_s20, %s5680_s20 }
  0x28   :  { %p5687_p4 = por %p5686_p3, %p5685_p2 }
  0x2a   :  { %p5688_p5 = pnand %p5687_p4, %p5681_p1 }
  0x2c   :  { %5691 = shalt.err (!%p5688_p5)
}
  0x2d   :  { %46 = dma.hbm_to_vmem [thread:$0]  %s6156_s2, 128, %s44_s17, [#allocation6]  }
  0x2e   :  { %s5724_s22 = smov [#allocation10]  }
  0x2f   :  { %s65_s23 = sshll.u32 %s5724_s22, 4  ;;  %s66_s23 = int_to_ptr.vmem [resolvable:$true] %s65_s23 }
  0x30   :  { %s5700_s24 = scalar_lea.vmem %s66_s23, 128  ;;  %p5705_p7 = scmp.lt.s32.totalorder %s66_s23, %s66_s23 }
  0x31   :  { %p5701_p6 = scmp.ne.s32.totalorder %s66_s23, %s5700_s24  ;;  %p5706_p8 = scmp.lt.s32.totalorder %s5700_s24, %s5700_s24 }
  0x33   :  { %p5707_p9 = por %p5706_p8, %p5705_p7 }
  0x35   :  { %p5708_p10 = pnand %p5707_p9, %p5701_p6 }
  0x37   :  { %5711 = shalt.err (!%p5708_p10)
}
  0x38   :  { %68 = dma.hbm_to_vmem [thread:$0]  %s6158_s4, 128, %s66_s23, [#allocation9]  }
  0x39   :  { %5712 = dma.done.wait [#allocation4], 128  }
  0x3a   :  { %5713 = vsyncadd [#allocation4], 4294967168 }
  0x3b   :  { %5714 = dma.done.wait [#allocation6], 640  }
  0x3c   :  { %5715 = vsyncadd [#allocation6], 4294966656 }
  0x3d   :  { %5716 = dma.done.wait [#allocation9], 65664  }
  0x3e   :  { %5717 = vsyncadd [#allocation9], 4294901632  ;;  %v5725_v1 = vmov 0   ;;  %v91_v2 = vld [vmem:[#allocation5] sm:$0xff]  ;;  %vm161_vm0 = vcmask 1043456   ;;  %v92_v3 = vld [vmem:[#allocation5 + $0x8] sm:$0xff] }
  0x3f   :  { %218 = vmatprep.mubr.bf16.mxu0 %v5725_v1  ;;  %259 = vmatprep.mubr.bf16.mxu1 %v5725_v1  ;;  %v89_v4 = vld [vmem:[#allocation3] sm:$0xff]  ;;  %v4847_v5 = vcombine.high %v91_v2, %v91_v2  ;;  %v4849_v6 = vcombine.high %v92_v3, %v92_v3  ;;  %v4846_v7 = vcombine.low %v91_v2, %v91_v2  ;;  %v93_v9 = vld [vmem:[#allocation5 + $0x10] sm:$0xff]  ;;  %v422_v14 = vld [vmem:[#allocation8 + $0x1c0] sm:$0xff]  ;;  %vm157_vm1 = vcmask 64512  }
  0x40   :  { %v4848_v8 = vcombine.low %v92_v3, %v92_v3  ;;  %v94_v10 = vld [vmem:[#allocation5 + $0x18] sm:$0xff]  ;;  %v4851_v11 = vcombine.high %v93_v9, %v93_v9  ;;  %v4850_v12 = vcombine.low %v93_v9, %v93_v9  ;;  %v90_v17 = vpack.c.bf16 %v89_v4, %v89_v4  ;;  %v426_v19 = vld [vmem:[#allocation8 + $0x1e0] sm:$0xff] }
  0x41   :  { %v4853_v13 = vcombine.high %v94_v10, %v94_v10  ;;  %4854 = vmatprep.subr.msk.bf16.mxu0 %vm161_vm0, %v4847_v5  ;;  %4856 = vmatprep.subr.msk.bf16.mxu1 %vm161_vm0, %v4849_v6  ;;  %v163_v15 = vsel %vm161_vm0, %v4846_v7, 0  ;;  %v4852_v18 = vcombine.low %v94_v10, %v94_v10  ;;  %v550_v20 = vld [vmem:[#allocation8 + $0x5c0] sm:$0xff]  ;;  %v4919_v24 = vcombine.high %v422_v14, %v426_v19 }
  0x42   :  { %v169_v16 = vsel %vm161_vm0, %v4848_v8, 0  ;;  %v554_v21 = vld [vmem:[#allocation8 + $0x5e0] sm:$0xff]  ;;  %201 = vmatpush1.bf16.msra.mxu0 %v163_v15  ;;  %v175_v22 = vsel %vm161_vm0, %v4850_v12, 0  ;;  %v4918_v30 = vcombine.low %v422_v14, %v426_v19  ;;  %vm4837_vm2 = vcmask 7168  }
  0x43   :  { %242 = vmatpush1.bf16.msra.mxu1 %v169_v16  ;;  %4858 = vmatprep.subr.msk.bf16.mxu0 %vm161_vm0, %v4851_v11  ;;  %v181_v23 = vsel %vm161_vm0, %v4852_v18, 0  ;;  %v5047_v25 = vcombine.high %v550_v20, %v554_v21  ;;  %v414_v26 = vld [vmem:[#allocation8 + $0x180] sm:$0xff]  ;;  %v5046_v31 = vcombine.low %v550_v20, %v554_v21 }
  0x44   :  { %4860 = vmatprep.subr.msk.bf16.mxu1 %vm161_vm0, %v4853_v13  ;;  %v418_v27 = vld [vmem:[#allocation8 + $0x1a0] sm:$0xff] }
  0x45   :  { %4855 = vmatmul.mubr.msk.bf16.vlgmr.msra.gmra.mxu0 %vm157_vm1, %v90_v17  ;;  %v542_v28 = vld [vmem:[#allocation8 + $0x580] sm:$0xff]  ;;  %v4911_v32 = vcombine.high %v414_v26, %v418_v27  ;;  %v4910_v38 = vcombine.low %v414_v26, %v418_v27 }
  0x46   :  { %4857 = vmatmul.mubr.msk.bf16.vlgmr.msra.gmra.mxu1 %vm157_vm1, %v90_v17  ;;  %283 = vmatpush1.bf16.msra.mxu0 %v175_v22  ;;  %v546_v29 = vld [vmem:[#allocation8 + $0x5a0] sm:$0xff] }
  0x47   :  { %300 = vmatprep.mubr.bf16.mxu0 %v5725_v1  ;;  %324 = vmatpush1.bf16.msra.mxu1 %v181_v23  ;;  %v5039_v33 = vcombine.high %v542_v28, %v546_v29  ;;  %v406_v34 = vld [vmem:[#allocation8 + $0x140] sm:$0xff]  ;;  %v5038_v39 = vcombine.low %v542_v28, %v546_v29 }
  0x48   :  { %341 = vmatprep.mubr.bf16.mxu1 %v5725_v1  ;;  %3480 = vmatprep.subr.bf16.mxu0 %v4919_v24  ;;  %v410_v35 = vld [vmem:[#allocation8 + $0x160] sm:$0xff] }
  0x49   :  { %3521 = vmatprep.subr.bf16.mxu1 %v5047_v25  ;;  %v534_v36 = vld [vmem:[#allocation8 + $0x540] sm:$0xff]  ;;  %v4903_v40 = vcombine.high %v406_v34, %v410_v35  ;;  %v4902_v46 = vcombine.low %v406_v34, %v410_v35 }
  0x4a   :  { %v538_v37 = vld [vmem:[#allocation8 + $0x560] sm:$0xff] }
  0x4b   :  { %v5031_v41 = vcombine.high %v534_v36, %v538_v37  ;;  %v398_v42 = vld [vmem:[#allocation8 + $0x100] sm:$0xff]  ;;  %v5030_v47 = vcombine.low %v534_v36, %v538_v37 }
  0x4c   :  { %v402_v43 = vld [vmem:[#allocation8 + $0x120] sm:$0xff] }
  0x4d   :  { %4859 = vmatmul.mubr.msk.bf16.vlgmr.msra.gmra.mxu0 %vm157_vm1, %v90_v17  ;;  %v526_v44 = vld [vmem:[#allocation8 + $0x500] sm:$0xff]  ;;  %v4895_v52 = vcombine.high %v398_v42, %v402_v43  ;;  %v4894_v54 = vcombine.low %v398_v42, %v402_v43 }
  0x4e   :  { %4861 = vmatmul.mubr.msk.bf16.vlgmr.msra.gmra.mxu1 %vm157_vm1, %v90_v17  ;;  %3481 = vmatpush1.bf16.msra.mxu0 %v4918_v30  ;;  %v530_v45 = vld [vmem:[#allocation8 + $0x520] sm:$0xff] }
  0x4f   :  { %3522 = vmatpush1.bf16.msra.mxu1 %v5046_v31  ;;  %3482 = vmatprep.subr.bf16.mxu0 %v4911_v32  ;;  %v390_v48 = vld [vmem:[#allocation8 + $0xc0] sm:$0xff]  ;;  %v5023_v53 = vcombine.high %v526_v44, %v530_v45  ;;  %v5022_v55 = vcombine.low %v526_v44, %v530_v45 }
  0x50   :  { %3523 = vmatprep.subr.bf16.mxu1 %v5039_v33  ;;  %v394_v49 = vld [vmem:[#allocation8 + $0xe0] sm:$0xff] }
  0x51   :  { %v518_v50 = vld [vmem:[#allocation8 + $0x4c0] sm:$0xff]  ;;  %v4887_v60 = vcombine.high %v390_v48, %v394_v49  ;;  %v4886_v62 = vcombine.low %v390_v48, %v394_v49 }
  0x52   :  { %3483 = vmatpush1.bf16.msra.mxu0 %v4910_v38  ;;  %v522_v51 = vld [vmem:[#allocation8 + $0x4e0] sm:$0xff] }
  0x53   :  { %3524 = vmatpush1.bf16.msra.mxu1 %v5038_v39  ;;  %3484 = vmatprep.subr.bf16.mxu0 %v4903_v40  ;;  %v382_v56 = vld [vmem:[#allocation8 + $0x80] sm:$0xff]  ;;  %v5015_v61 = vcombine.high %v518_v50, %v522_v51  ;;  %v5014_v63 = vcombine.low %v518_v50, %v522_v51 }
  0x54   :  { %3525 = vmatprep.subr.bf16.mxu1 %v5031_v41  ;;  %v386_v57 = vld [vmem:[#allocation8 + $0xa0] sm:$0xff] }
  0x55   :  { %v510_v58 = vld [vmem:[#allocation8 + $0x480] sm:$0xff]  ;;  %v4879_v4 = vcombine.high %v382_v56, %v386_v57  ;;  %v4878_v6 = vcombine.low %v382_v56, %v386_v57 }
  0x56   :  { %3485 = vmatpush1.bf16.msra.mxu0 %v4902_v46  ;;  %v514_v59 = vld [vmem:[#allocation8 + $0x4a0] sm:$0xff] }
  0x57   :  { %3526 = vmatpush1.bf16.msra.mxu1 %v5030_v47  ;;  %3486 = vmatprep.subr.bf16.mxu0 %v4895_v52  ;;  %v374_v0 = vld [vmem:[#allocation8 + $0x40] sm:$0xff]  ;;  %v5007_v5 = vcombine.high %v510_v58, %v514_v59  ;;  %v5006_v7 = vcombine.low %v510_v58, %v514_v59 }
  0x58   :  { %3527 = vmatprep.subr.bf16.mxu1 %v5023_v53  ;;  %v378_v1 = vld [vmem:[#allocation8 + $0x60] sm:$0xff] }
  0x59   :  { %v502_v2 = vld [vmem:[#allocation8 + $0x440] sm:$0xff]  ;;  %v4871_v12 = vcombine.high %v374_v0, %v378_v1  ;;  %v4870_v14 = vcombine.low %v374_v0, %v378_v1 }
  0x5a   :  { %3487 = vmatpush1.bf16.msra.mxu0 %v4894_v54  ;;  %v506_v3 = vld [vmem:[#allocation8 + $0x460] sm:$0xff] }
  0x5b   :  { %3528 = vmatpush1.bf16.msra.mxu1 %v5022_v55  ;;  %3488 = vmatprep.subr.bf16.mxu0 %v4887_v60  ;;  %v366_v8 = vld [vmem:[#allocation8] sm:$0xff]  ;;  %v4999_v13 = vcombine.high %v502_v2, %v506_v3  ;;  %v4998_v15 = vcombine.low %v502_v2, %v506_v3 }
  0x5c   :  { %3529 = vmatprep.subr.bf16.mxu1 %v5015_v61  ;;  %v370_v9 = vld [vmem:[#allocation8 + $0x20] sm:$0xff] }
  0x5d   :  { %v494_v10 = vld [vmem:[#allocation8 + $0x400] sm:$0xff]  ;;  %v4863_v20 = vcombine.high %v366_v8, %v370_v9  ;;  %v4862_v22 = vcombine.low %v366_v8, %v370_v9 }
  0x5e   :  { %3489 = vmatpush1.bf16.msra.mxu0 %v4886_v62  ;;  %v498_v11 = vld [vmem:[#allocation8 + $0x420] sm:$0xff] }
  0x5f   :  { %3530 = vmatpush1.bf16.msra.mxu1 %v5014_v63  ;;  %3490 = vmatprep.subr.bf16.mxu0 %v4879_v4  ;;  %v486_v16 = vld [vmem:[#allocation8 + $0x3c0] sm:$0xff]  ;;  %v4991_v21 = vcombine.high %v494_v10, %v498_v11  ;;  %v4990_v23 = vcombine.low %v494_v10, %v498_v11 }
  0x60   :  { %3531 = vmatprep.subr.bf16.mxu1 %v5007_v5  ;;  %v490_v17 = vld [vmem:[#allocation8 + $0x3e0] sm:$0xff] }
  0x61   :  { %v614_v18 = vld [vmem:[#allocation8 + $0x7c0] sm:$0xff]  ;;  %v4983_v28 = vcombine.high %v486_v16, %v490_v17  ;;  %v4982_v30 = vcombine.low %v486_v16, %v490_v17 }
  0x62   :  { %3491 = vmatpush1.bf16.msra.mxu0 %v4878_v6  ;;  %v618_v19 = vld [vmem:[#allocation8 + $0x7e0] sm:$0xff] }
  0x63   :  { %3532 = vmatpush1.bf16.msra.mxu1 %v5006_v7  ;;  %3492 = vmatprep.subr.bf16.mxu0 %v4871_v12  ;;  %v478_v24 = vld [vmem:[#allocation8 + $0x380] sm:$0xff]  ;;  %v5111_v29 = vcombine.high %v614_v18, %v618_v19  ;;  %v5110_v31 = vcombine.low %v614_v18, %v618_v19 }
  0x64   :  { %3533 = vmatprep.subr.bf16.mxu1 %v4999_v13  ;;  %v482_v25 = vld [vmem:[#allocation8 + $0x3a0] sm:$0xff] }
  0x65   :  { %v606_v26 = vld [vmem:[#allocation8 + $0x780] sm:$0xff]  ;;  %v4975_v36 = vcombine.high %v478_v24, %v482_v25  ;;  %v4974_v38 = vcombine.low %v478_v24, %v482_v25 }
  0x66   :  { %3493 = vmatpush1.bf16.msra.mxu0 %v4870_v14  ;;  %v610_v27 = vld [vmem:[#allocation8 + $0x7a0] sm:$0xff] }
  0x67   :  { %3534 = vmatpush1.bf16.msra.mxu1 %v4998_v15  ;;  %3494 = vmatprep.subr.bf16.mxu0 %v4863_v20  ;;  %v470_v32 = vld [vmem:[#allocation8 + $0x340] sm:$0xff]  ;;  %v5103_v37 = vcombine.high %v606_v26, %v610_v27  ;;  %v5102_v39 = vcombine.low %v606_v26, %v610_v27 }
  0x68   :  { %3535 = vmatprep.subr.bf16.mxu1 %v4991_v21  ;;  %v474_v33 = vld [vmem:[#allocation8 + $0x360] sm:$0xff] }
  0x69   :  { %v598_v34 = vld [vmem:[#allocation8 + $0x740] sm:$0xff]  ;;  %v4967_v44 = vcombine.high %v470_v32, %v474_v33  ;;  %v4966_v46 = vcombine.low %v470_v32, %v474_v33  ;;  %v5812_v32 = vld [vmem:[#allocation7] sm:$0xff] }
  0x6a   :  { %3495 = vmatpush1.bf16.msra.mxu0 %v4862_v22  ;;  %v602_v35 = vld [vmem:[#allocation8 + $0x760] sm:$0xff] }
  0x6b   :  { %3536 = vmatpush1.bf16.msra.mxu1 %v4990_v23  ;;  %3496 = vmatprep.subr.bf16.mxu0 %v4983_v28  ;;  %v462_v40 = vld [vmem:[#allocation8 + $0x300] sm:$0xff]  ;;  %v5095_v45 = vcombine.high %v598_v34, %v602_v35  ;;  %v5094_v47 = vcombine.low %v598_v34, %v602_v35  ;;  %v97_v28 = vlaneseq }
  0x6c   :  { %3537 = vmatprep.subr.bf16.mxu1 %v5111_v29  ;;  %v466_v41 = vld [vmem:[#allocation8 + $0x320] sm:$0xff] }
  0x6d   :  { %v590_v42 = vld [vmem:[#allocation8 + $0x700] sm:$0xff]  ;;  %v4959_v52 = vcombine.high %v462_v40, %v466_v41  ;;  %v4958_v54 = vcombine.low %v462_v40, %v466_v41  ;;  %v5808_v29 = vshrl.u32 %v97_v28, 7 }
  0x6e   :  { %3497 = vmatpush2.bf16.msra.mxu0 %v4982_v30  ;;  %v594_v43 = vld [vmem:[#allocation8 + $0x720] sm:$0xff] }
  0x6f   :  { %3538 = vmatpush2.bf16.msra.mxu1 %v5110_v31  ;;  %3498 = vmatprep.subr.bf16.mxu0 %v4975_v36  ;;  %v454_v48 = vld [vmem:[#allocation8 + $0x2c0] sm:$0xff]  ;;  %v5087_v53 = vcombine.high %v590_v42, %v594_v43  ;;  %v5086_v55 = vcombine.low %v590_v42, %v594_v43  ;;  %v99_v30 = vsub.s32 0, %v5808_v29  ;;  %v107_v31 = vsub.s32 2, %v5808_v29 }
  0x70   :  { %3539 = vmatprep.subr.bf16.mxu1 %v5103_v37  ;;  %v458_v49 = vld [vmem:[#allocation8 + $0x2e0] sm:$0xff]  ;;  %v103_v33 = vsub.s32 1, %v5808_v29  ;;  %v111_v34 = vsub.s32 3, %v5808_v29 }
  0x71   :  { %v582_v50 = vld [vmem:[#allocation8 + $0x6c0] sm:$0xff]  ;;  %v4951_v60 = vcombine.high %v454_v48, %v458_v49  ;;  %v4950_v62 = vcombine.low %v454_v48, %v458_v49  ;;  %v100_v35 = vrot.slane %v5812_v32, %v99_v30  ;;  %v108_v36 = vrot.slane %v5812_v32, %v107_v31 }
  0x72   :  { %3499 = vmatpush2.bf16.msra.mxu0 %v4974_v38  ;;  %v586_v51 = vld [vmem:[#allocation8 + $0x6e0] sm:$0xff]  ;;  %v104_v37 = vrot.slane %v5812_v32, %v103_v33  ;;  %v112_v38 = vrot.slane %v5812_v32, %v111_v34  ;;  %v127_v49 = vsub.s32 7, %v5808_v29 }
  0x73   :  { %3540 = vmatpush2.bf16.msra.mxu1 %v5102_v39  ;;  %3500 = vmatprep.subr.bf16.mxu0 %v4967_v44  ;;  %v446_v56 = vld [vmem:[#allocation8 + $0x280] sm:$0xff]  ;;  %v5079_v61 = vcombine.high %v582_v50, %v586_v51  ;;  %v5078_v63 = vcombine.low %v582_v50, %v586_v51 }
  0x74   :  { %3541 = vmatprep.subr.bf16.mxu1 %v5095_v45  ;;  %v450_v57 = vld [vmem:[#allocation8 + $0x2a0] sm:$0xff]  ;;  %v119_v45 = vsub.s32 5, %v5808_v29 }
  0x75   :  { %v574_v58 = vld [vmem:[#allocation8 + $0x680] sm:$0xff]  ;;  %v4943_v0 = vcombine.high %v446_v56, %v450_v57  ;;  %v4942_v2 = vcombine.low %v446_v56, %v450_v57 }
  0x76   :  { %3501 = vmatpush2.bf16.msra.mxu0 %v4966_v46  ;;  %v578_v59 = vld [vmem:[#allocation8 + $0x6a0] sm:$0xff] }
  0x77   :  { %3542 = vmatpush2.bf16.msra.mxu1 %v5094_v47  ;;  %3502 = vmatprep.subr.bf16.mxu0 %v4959_v52  ;;  %v5071_v1 = vcombine.high %v574_v58, %v578_v59  ;;  %v5070_v3 = vcombine.low %v574_v58, %v578_v59  ;;  %v438_v4 = vld [vmem:[#allocation8 + $0x240] sm:$0xff] }
  0x78   :  { %3543 = vmatprep.subr.bf16.mxu1 %v5087_v53  ;;  %v442_v5 = vld [vmem:[#allocation8 + $0x260] sm:$0xff] }
  0x79   :  { %v566_v6 = vld [vmem:[#allocation8 + $0x640] sm:$0xff]  ;;  %v4935_v7 = vcombine.high %v438_v4, %v442_v5  ;;  %v4934_v9 = vcombine.low %v438_v4, %v442_v5 }
  0x7a   :  { %3503 = vmatpush2.bf16.msra.mxu0 %v4958_v54  ;;  %v570_v8 = vld [vmem:[#allocation8 + $0x660] sm:$0xff] }
  0x7b   :  { %3544 = vmatpush2.bf16.msra.mxu1 %v5086_v55  ;;  %3504 = vmatprep.subr.bf16.mxu0 %v4951_v60  ;;  %v5062_v10 = vcombine.low %v566_v6, %v570_v8  ;;  %v5063_v11 = vcombine.high %v566_v6, %v570_v8  ;;  %v430_v12 = vld [vmem:[#allocation8 + $0x200] sm:$0xff] }
  0x7c   :  { %3545 = vmatprep.subr.bf16.mxu1 %v5079_v61  ;;  %v434_v13 = vld [vmem:[#allocation8 + $0x220] sm:$0xff] }
  0x7d   :  { %v558_v14 = vld [vmem:[#allocation8 + $0x600] sm:$0xff]  ;;  %v4927_v15 = vcombine.high %v430_v12, %v434_v13  ;;  %v4926_v17 = vcombine.low %v430_v12, %v434_v13 }
  0x7e   :  { %3505 = vmatpush2.bf16.msra.mxu0 %v4950_v62  ;;  %v562_v16 = vld [vmem:[#allocation8 + $0x620] sm:$0xff] }
  0x7f   :  { %3546 = vmatpush2.bf16.msra.mxu1 %v5078_v63  ;;  %3506 = vmatprep.subr.bf16.mxu0 %v4943_v0  ;;  %v5054_v18 = vcombine.low %v558_v14, %v562_v16  ;;  %v5055_v19 = vcombine.high %v558_v14, %v562_v16  ;;  %v5796_v20 = vld [vmem:[#allocation8 + $0x9c0] sm:$0xff]  ;;  %v120_v0 = vrot.slane %v5812_v32, %v119_v45 }
  0x80   :  { %3547 = vmatprep.subr.bf16.mxu1 %v5071_v1  ;;  %v5798_v21 = vld [vmem:[#allocation8 + $0x9e0] sm:$0xff]  ;;  %v128_v1 = vrot.slane %v5812_v32, %v127_v49 }
  0x81   :  { %v5800_v22 = vld [vmem:[#allocation8 + $0xdc0] sm:$0xff]  ;;  %v5175_v23 = vcombine.high %v5796_v20, %v5798_v21  ;;  %v5174_v25 = vcombine.low %v5796_v20, %v5798_v21 }
  0x82   :  { %3507 = vmatpush2.bf16.msra.mxu0 %v4942_v2  ;;  %v810_v24 = vld [vmem:[#allocation8 + $0xde0] sm:$0xff] }
  0x83   :  { %3548 = vmatpush2.bf16.msra.mxu1 %v5070_v3  ;;  %3508 = vmatprep.subr.bf16.mxu0 %v4935_v7  ;;  %v5302_v26 = vcombine.low %v5800_v22, %v810_v24  ;;  %v5303_v27 = vcombine.high %v5800_v22, %v810_v24  ;;  %v670_v53 = vld [vmem:[#allocation8 + $0x980] sm:$0xff] }
  0x84   :  { %3549 = vmatprep.subr.bf16.mxu1 %v5063_v11  ;;  %v674_v56 = vld [vmem:[#allocation8 + $0x9a0] sm:$0xff] }
  0x85   :  { %v798_v57 = vld [vmem:[#allocation8 + $0xd80] sm:$0xff]  ;;  %v5167_v3 = vcombine.high %v670_v53, %v674_v56  ;;  %v5166_v11 = vcombine.low %v670_v53, %v674_v56 }
  0x86   :  { %3509 = vmatpush2.bf16.msra.mxu0 %v4934_v9  ;;  %v802_v58 = vld [vmem:[#allocation8 + $0xda0] sm:$0xff] }
  0x87   :  { %3550 = vmatpush2.bf16.msra.mxu1 %v5062_v10  ;;  %3510 = vmatprep.subr.bf16.mxu0 %v4927_v15  ;;  %v5295_v4 = vcombine.high %v798_v57, %v802_v58  ;;  %v662_v5 = vld [vmem:[#allocation8 + $0x940] sm:$0xff]  ;;  %v5294_v14 = vcombine.low %v798_v57, %v802_v58 }
  0x88   :  { %3551 = vmatprep.subr.bf16.mxu1 %v5055_v19  ;;  %v666_v8 = vld [vmem:[#allocation8 + $0x960] sm:$0xff] }
  0x89   :  { %v790_v9 = vld [vmem:[#allocation8 + $0xd40] sm:$0xff] }
  0x8a   :  { %3511 = vmatpush2.bf16.msra.mxu0 %v4926_v17  ;;  %v794_v10 = vld [vmem:[#allocation8 + $0xd60] sm:$0xff]  ;;  %v5159_v17 = vcombine.high %v662_v5, %v666_v8 }
  0x8b   :  { %3552 = vmatpush2.bf16.msra.mxu1 %v5054_v18  ;;  %3562 = vmatprep.subr.bf16.mxu0 %v5175_v23  ;;  %v5287_v18 = vcombine.high %v790_v9, %v794_v10  ;;  %v654_v19 = vld [vmem:[#allocation8 + $0x900] sm:$0xff] }
  0x8c   :  { %3603 = vmatprep.subr.bf16.mxu1 %v5303_v27  ;;  %v658_v22 = vld [vmem:[#allocation8 + $0x920] sm:$0xff] }
  0x8d   :  { %v782_v23 = vld [vmem:[#allocation8 + $0xd00] sm:$0xff] }
  0x8e   :  { %v786_v24 = vld [vmem:[#allocation8 + $0xd20] sm:$0xff] }
  0x8f   :  { %v766_v53 = vld [vmem:[#allocation8 + $0xc80] sm:$0xff] }
 0x105   :  { %v220_v39 = vpop.f32.mrf.mxu0 }
 0x106   :  { %v261_v40 = vpop.f32.mrf.mxu1  ;;  %v221_v41 = vadd.f32 %v220_v39, %v100_v35  ;;  %v5158_v35 = vcombine.low %v662_v5, %v666_v8  ;;  %v5151_v39 = vcombine.high %v654_v19, %v658_v22 }
 0x107   :  { %v262_v42 = vadd.f32 %v261_v40, %v108_v36  ;;  %v222_v43 = vpop.f32.mrf.mxu0  ;;  %v5279_v40 = vcombine.high %v782_v23, %v786_v24 }
 0x108   :  { %v263_v44 = vpop.f32.mrf.mxu1  ;;  %v223_v47 = vadd.f32 %v222_v43, %v104_v37  ;;  %v350_v50 = vmax.f32 %v221_v41, 0.0  ;;  %v646_v41 = vld [vmem:[#allocation8 + $0x8c0] sm:$0xff] }
 0x109   :  { %v352_v46 = vmax.f32 %v262_v42, 0.0  ;;  %v264_v48 = vadd.f32 %v263_v44, %v112_v38  ;;  %v224_v51 = vpop.f32.mrf.mxu0  ;;  %v650_v42 = vld [vmem:[#allocation8 + $0x8e0] sm:$0xff] }
 0x10a   :  { %v265_v52 = vpop.f32.mrf.mxu1  ;;  %v351_v54 = vmax.f32 %v223_v47, 0.0  ;;  %v5842_v2 = vpack.c.bf16 %v350_v50, %v350_v50  ;;  %v774_v43 = vld [vmem:[#allocation8 + $0xcc0] sm:$0xff]  ;;  %v5278_v47 = vcombine.low %v782_v23, %v786_v24 }
 0x10b   :  { %v353_v55 = vmax.f32 %v264_v48, 0.0  ;;  %v5830_v59 = vpack.c.bf16 %v352_v46, %v352_v46  ;;  %v225_v60 = vpop.f32.mrf.mxu0  ;;  %v778_v44 = vld [vmem:[#allocation8 + $0xce0] sm:$0xff]  ;;  %v5150_v46 = vcombine.low %v654_v19, %v658_v22  ;;  %v5143_v48 = vcombine.high %v646_v41, %v650_v42 }
 0x10c   :  { %v266_v61 = vpop.f32.mrf.mxu1  ;;  %v5832_v62 = vpack.c.bf16 %v351_v54, %v351_v54  ;;  %v5271_v50 = vcombine.high %v774_v43, %v778_v44  ;;  %v638_v51 = vld [vmem:[#allocation8 + $0x880] sm:$0xff]  ;;  %v5270_v56 = vcombine.low %v774_v43, %v778_v44 }
 0x10d   :  { %v5834_v63 = vpack.c.bf16 %v353_v55, %v353_v55  ;;  %v5844_v6 = vpop.f32.mrf.mxu0  ;;  %v642_v52 = vld [vmem:[#allocation8 + $0x8a0] sm:$0xff]  ;;  %v5142_v55 = vcombine.low %v646_v41, %v650_v42 }
 0x10e   :  { %v5846_v7 = vpop.f32.mrf.mxu1  ;;  %3512 = vmatprep.mubr.bf16.mxu0 %v5832_v62  ;;  %v770_v54 = vld [vmem:[#allocation8 + $0xca0] sm:$0xff]  ;;  %v5135_v57 = vcombine.high %v638_v51, %v642_v52 }
 0x10f   :  { %3553 = vmatprep.mubr.bf16.mxu1 %v5834_v63  ;;  %3513 = vmatmul.mubr.bf16.vlgmr.msra.gmra.mxu0 %v5842_v2  ;;  %v304_v12 = vpop.f32.mrf.mxu0  ;;  %v5263_v58 = vcombine.high %v766_v53, %v770_v54  ;;  %v630_v60 = vld [vmem:[#allocation8 + $0x840] sm:$0xff] }
 0x110   :  { %3554 = vmatmul.mubr.bf16.vlgmr.msra.gmra.mxu1 %v5830_v59  ;;  %v345_v13 = vpop.f32.mrf.mxu1  ;;  %3563 = vmatpush1.bf16.msra.mxu0 %v5174_v25  ;;  %v305_v15 = vadd.f32 %v304_v12, %v120_v0  ;;  %v5286_v25 = vcombine.low %v790_v9, %v794_v10  ;;  %v634_v61 = vld [vmem:[#allocation8 + $0x860] sm:$0xff] }
 0x111   :  { %3604 = vmatpush1.bf16.msra.mxu1 %v5302_v26  ;;  %v346_v16 = vadd.f32 %v345_v13, %v128_v1  ;;  %3564 = vmatprep.subr.bf16.mxu0 %v5167_v3  ;;  %v306_v20 = vpop.f32.mrf.mxu0  ;;  %v758_v0 = vld [vmem:[#allocation8 + $0xc40] sm:$0xff]  ;;  %v5134_v3 = vcombine.low %v638_v51, %v642_v52  ;;  %v5127_v5 = vcombine.high %v630_v60, %v634_v61 }
 0x112   :  { %3605 = vmatprep.subr.bf16.mxu1 %v5295_v4  ;;  %v347_v21 = vpop.f32.mrf.mxu1  ;;  %v355_v27 = vmax.f32 %v305_v15, 0.0  ;;  %v762_v1 = vld [vmem:[#allocation8 + $0xc60] sm:$0xff]  ;;  %v5262_v4 = vcombine.low %v766_v53, %v770_v54  ;;  %v5126_v13 = vcombine.low %v630_v60, %v634_v61 }
 0x113   :  { %v357_v28 = vmax.f32 %v346_v16, 0.0  ;;  %v307_v36 = vpop.f32.mrf.mxu0  ;;  %v5255_v8 = vcombine.high %v758_v0, %v762_v1  ;;  %v622_v9 = vld [vmem:[#allocation8 + $0x800] sm:$0xff] }
 0x114   :  { %v348_v37 = vpop.f32.mrf.mxu1  ;;  %3565 = vmatpush1.bf16.msra.mxu0 %v5166_v11  ;;  %v5852_v26 = vpack.c.bf16 %v355_v27, %v355_v27  ;;  %v626_v10 = vld [vmem:[#allocation8 + $0x820] sm:$0xff] }
 0x115   :  { %3606 = vmatpush1.bf16.msra.mxu1 %v5294_v14  ;;  %v5854_v38 = vpack.c.bf16 %v357_v28, %v357_v28  ;;  %3566 = vmatprep.subr.bf16.mxu0 %v5159_v17  ;;  %v750_v11 = vld [vmem:[#allocation8 + $0xc00] sm:$0xff]  ;;  %v5254_v14 = vcombine.low %v758_v0, %v762_v1  ;;  %v5119_v15 = vcombine.high %v622_v9, %v626_v10 }
 0x116   :  { %3607 = vmatprep.subr.bf16.mxu1 %v5287_v18  ;;  %3594 = vmatprep.mubr.bf16.mxu0 %v5852_v26  ;;  %v754_v12 = vld [vmem:[#allocation8 + $0xc20] sm:$0xff]  ;;  %v5118_v21 = vcombine.low %v622_v9, %v626_v10 }
 0x117   :  { %3635 = vmatprep.mubr.bf16.mxu1 %v5854_v38  ;;  %v5247_v16 = vcombine.high %v750_v11, %v754_v12  ;;  %v742_v17 = vld [vmem:[#allocation8 + $0xbc0] sm:$0xff]  ;;  %v5246_v22 = vcombine.low %v750_v11, %v754_v12 }
 0x118   :  { %3567 = vmatpush1.bf16.msra.mxu0 %v5158_v35  ;;  %v746_v18 = vld [vmem:[#allocation8 + $0xbe0] sm:$0xff] }
 0x119   :  { %3608 = vmatpush1.bf16.msra.mxu1 %v5286_v25  ;;  %3568 = vmatprep.subr.bf16.mxu0 %v5151_v39  ;;  %v870_v19 = vld [vmem:[#allocation8 + $0xfc0] sm:$0xff]  ;;  %v5239_v23 = vcombine.high %v742_v17, %v746_v18  ;;  %v5238_v37 = vcombine.low %v742_v17, %v746_v18 }
 0x11a   :  { %3609 = vmatprep.subr.bf16.mxu1 %v5279_v40  ;;  %v874_v20 = vld [vmem:[#allocation8 + $0xfe0] sm:$0xff] }
 0x11b   :  { %v5367_v24 = vcombine.high %v870_v19, %v874_v20  ;;  %v734_v27 = vld [vmem:[#allocation8 + $0xb80] sm:$0xff]  ;;  %v5366_v25 = vcombine.low %v870_v19, %v874_v20 }
 0x11c   :  { %3569 = vmatpush1.bf16.msra.mxu0 %v5150_v46  ;;  %v738_v28 = vld [vmem:[#allocation8 + $0xba0] sm:$0xff] }
 0x11d   :  { %3610 = vmatpush1.bf16.msra.mxu1 %v5278_v47  ;;  %3570 = vmatprep.subr.bf16.mxu0 %v5143_v48  ;;  %v862_v35 = vld [vmem:[#allocation8 + $0xf80] sm:$0xff]  ;;  %v5231_v39 = vcombine.high %v734_v27, %v738_v28  ;;  %v5230_v46 = vcombine.low %v734_v27, %v738_v28 }
 0x11e   :  { %3611 = vmatprep.subr.bf16.mxu1 %v5271_v50  ;;  %v866_v36 = vld [vmem:[#allocation8 + $0xfa0] sm:$0xff] }
 0x11f   :  { %v5359_v40 = vcombine.high %v862_v35, %v866_v36  ;;  %v726_v41 = vld [vmem:[#allocation8 + $0xb40] sm:$0xff]  ;;  %v5358_v47 = vcombine.low %v862_v35, %v866_v36 }
 0x120   :  { %3571 = vmatpush1.bf16.msra.mxu0 %v5142_v55  ;;  %v730_v42 = vld [vmem:[#allocation8 + $0xb60] sm:$0xff] }
 0x121   :  { %3612 = vmatpush1.bf16.msra.mxu1 %v5270_v56  ;;  %3572 = vmatprep.subr.bf16.mxu0 %v5135_v57  ;;  %v854_v43 = vld [vmem:[#allocation8 + $0xf40] sm:$0xff]  ;;  %v5223_v48 = vcombine.high %v726_v41, %v730_v42  ;;  %v5222_v55 = vcombine.low %v726_v41, %v730_v42 }
 0x122   :  { %3613 = vmatprep.subr.bf16.mxu1 %v5263_v58  ;;  %v858_v44 = vld [vmem:[#allocation8 + $0xf60] sm:$0xff] }
 0x123   :  { %v5351_v50 = vcombine.high %v854_v43, %v858_v44  ;;  %v718_v51 = vld [vmem:[#allocation8 + $0xb00] sm:$0xff]  ;;  %v5350_v56 = vcombine.low %v854_v43, %v858_v44 }
 0x124   :  { %3573 = vmatpush1.bf16.msra.mxu0 %v5134_v3  ;;  %v722_v52 = vld [vmem:[#allocation8 + $0xb20] sm:$0xff] }
 0x125   :  { %3614 = vmatpush1.bf16.msra.mxu1 %v5262_v4  ;;  %3574 = vmatprep.subr.bf16.mxu0 %v5127_v5  ;;  %v846_v53 = vld [vmem:[#allocation8 + $0xf00] sm:$0xff]  ;;  %v5215_v57 = vcombine.high %v718_v51, %v722_v52  ;;  %v5214_v3 = vcombine.low %v718_v51, %v722_v52  ;;  %v555_v51 = vld [vmem:[#allocation8 + $0x5e8] sm:$0xff] }
 0x126   :  { %3615 = vmatprep.subr.bf16.mxu1 %v5255_v8  ;;  %v850_v54 = vld [vmem:[#allocation8 + $0xf20] sm:$0xff] }
 0x127   :  { %v5343_v58 = vcombine.high %v846_v53, %v850_v54  ;;  %v710_v60 = vld [vmem:[#allocation8 + $0xac0] sm:$0xff]  ;;  %v5342_v4 = vcombine.low %v846_v53, %v850_v54 }
 0x128   :  { %3575 = vmatpush1.bf16.msra.mxu0 %v5126_v13  ;;  %v714_v61 = vld [vmem:[#allocation8 + $0xae0] sm:$0xff]  ;;  %v123_v13 = vsub.s32 6, %v5808_v29 }
 0x129   :  { %3616 = vmatpush1.bf16.msra.mxu1 %v5254_v14  ;;  %3576 = vmatprep.subr.bf16.mxu0 %v5119_v15  ;;  %v838_v0 = vld [vmem:[#allocation8 + $0xec0] sm:$0xff]  ;;  %v5207_v5 = vcombine.high %v710_v60, %v714_v61  ;;  %v5206_v14 = vcombine.low %v710_v60, %v714_v61  ;;  %v543_v60 = vld [vmem:[#allocation8 + $0x588] sm:$0xff] }
 0x12a   :  { %3617 = vmatprep.subr.bf16.mxu1 %v5247_v16  ;;  %v842_v1 = vld [vmem:[#allocation8 + $0xee0] sm:$0xff]  ;;  %v115_v16 = vsub.s32 4, %v5808_v29  ;;  %v547_v61 = vld [vmem:[#allocation8 + $0x5a8] sm:$0xff] }
 0x12b   :  { %v5335_v8 = vcombine.high %v838_v0, %v842_v1  ;;  %v702_v9 = vld [vmem:[#allocation8 + $0xa80] sm:$0xff]  ;;  %v5334_v15 = vcombine.low %v838_v0, %v842_v1 }
 0x12c   :  { %3577 = vmatpush1.bf16.msra.mxu0 %v5118_v21  ;;  %v706_v10 = vld [vmem:[#allocation8 + $0xaa0] sm:$0xff]  ;;  %v116_v28 = vrot.slane %v5812_v32, %v115_v16 }
 0x12d   :  { %3618 = vmatpush1.bf16.msra.mxu1 %v5246_v22  ;;  %3578 = vmatprep.subr.bf16.mxu0 %v5239_v23  ;;  %v830_v11 = vld [vmem:[#allocation8 + $0xe80] sm:$0xff]  ;;  %v5199_v17 = vcombine.high %v702_v9, %v706_v10  ;;  %v124_v23 = vrot.slane %v5812_v32, %v123_v13 }
 0x12e   :  { %3619 = vmatprep.subr.bf16.mxu1 %v5367_v24  ;;  %v834_v12 = vld [vmem:[#allocation8 + $0xea0] sm:$0xff]  ;;  %v5198_v24 = vcombine.low %v702_v9, %v706_v10  ;;  %v303_v44 = vadd.f32 %v5844_v6, %v116_v28  ;;  %v411_v9 = vld [vmem:[#allocation8 + $0x168] sm:$0xff] }
 0x12f   :  { %v5327_v18 = vcombine.high %v830_v11, %v834_v12  ;;  %v694_v19 = vld [vmem:[#allocation8 + $0xa40] sm:$0xff]  ;;  %v5326_v27 = vcombine.low %v830_v11, %v834_v12  ;;  %v344_v41 = vadd.f32 %v5846_v7, %v124_v23  ;;  %v535_v10 = vld [vmem:[#allocation8 + $0x548] sm:$0xff] }
 0x130   :  { %3579 = vmatpush2.bf16.msra.mxu0 %v5238_v37  ;;  %v698_v20 = vld [vmem:[#allocation8 + $0xa60] sm:$0xff]  ;;  %v354_v7 = vmax.f32 %v303_v44, 0.0  ;;  %v539_v11 = vld [vmem:[#allocation8 + $0x568] sm:$0xff] }
 0x131   :  { %3620 = vmatpush2.bf16.msra.mxu1 %v5366_v25  ;;  %3580 = vmatprep.subr.bf16.mxu0 %v5231_v39  ;;  %v822_v21 = vld [vmem:[#allocation8 + $0xe40] sm:$0xff]  ;;  %v5191_v35 = vcombine.high %v694_v19, %v698_v20  ;;  %v5190_v42 = vcombine.low %v694_v19, %v698_v20  ;;  %v356_v52 = vmax.f32 %v344_v41, 0.0  ;;  %v403_v19 = vld [vmem:[#allocation8 + $0x128] sm:$0xff]  ;;  %v5032_v23 = vcombine.low %v535_v10, %v539_v11 }
 0x132   :  { %3621 = vmatprep.subr.bf16.mxu1 %v5359_v40  ;;  %v826_v22 = vld [vmem:[#allocation8 + $0xe60] sm:$0xff]  ;;  %v5870_v1 = vpack.c.bf16 %v354_v7, %v354_v7  ;;  %v527_v20 = vld [vmem:[#allocation8 + $0x508] sm:$0xff] }
 0x133   :  { %v5319_v36 = vcombine.high %v822_v21, %v826_v22  ;;  %v686_v37 = vld [vmem:[#allocation8 + $0xa00] sm:$0xff]  ;;  %v5318_v43 = vcombine.low %v822_v21, %v826_v22  ;;  %v5868_v6 = vpack.c.bf16 %v356_v52, %v356_v52  ;;  %v531_v21 = vld [vmem:[#allocation8 + $0x528] sm:$0xff] }
 0x134   :  { %3581 = vmatpush2.bf16.msra.mxu0 %v5230_v46  ;;  %v690_v25 = vld [vmem:[#allocation8 + $0xa20] sm:$0xff]  ;;  %v391_v28 = vld [vmem:[#allocation8 + $0xc8] sm:$0xff] }
 0x135   :  { %3622 = vmatpush2.bf16.msra.mxu1 %v5358_v47  ;;  %3582 = vmatprep.subr.bf16.mxu0 %v5223_v48  ;;  %v814_v39 = vld [vmem:[#allocation8 + $0xe00] sm:$0xff]  ;;  %v5183_v46 = vcombine.high %v686_v37, %v690_v25  ;;  %v423_v47 = vld [vmem:[#allocation8 + $0x1c8] sm:$0xff]  ;;  %v5182_v53 = vcombine.low %v686_v37, %v690_v25 }
 0x136   :  { %3623 = vmatprep.subr.bf16.mxu1 %v5351_v50  ;;  %v818_v40 = vld [vmem:[#allocation8 + $0xe20] sm:$0xff]  ;;  %v427_v48 = vld [vmem:[#allocation8 + $0x1e8] sm:$0xff] }
 0x137   :  { %v5311_v32 = vcombine.high %v814_v39, %v818_v40  ;;  %v551_v50 = vld [vmem:[#allocation8 + $0x5c8] sm:$0xff]  ;;  %v5310_v54 = vcombine.low %v814_v39, %v818_v40  ;;  %v4920_v0 = vcombine.low %v423_v47, %v427_v48  ;;  %v5024_v39 = vcombine.low %v527_v20, %v531_v21 }
 0x138   :  { %3583 = vmatpush2.bf16.msra.mxu0 %v5222_v55  ;;  %v4921_v55 = vcombine.high %v423_v47, %v427_v48  ;;  %v523_v37 = vld [vmem:[#allocation8 + $0x4e8] sm:$0xff] }
 0x139   :  { %3624 = vmatpush2.bf16.msra.mxu1 %v5350_v56  ;;  %3584 = vmatprep.subr.bf16.mxu0 %v5215_v57  ;;  %v5049_v56 = vcombine.high %v551_v50, %v555_v51  ;;  %v415_v57 = vld [vmem:[#allocation8 + $0x188] sm:$0xff] }
 0x13a   :  { %3625 = vmatprep.subr.bf16.mxu1 %v5343_v58  ;;  %v419_v58 = vld [vmem:[#allocation8 + $0x1a8] sm:$0xff] }
 0x13b   :  { %v4912_v12 = vcombine.low %v415_v57, %v419_v58  ;;  %v511_v44 = vld [vmem:[#allocation8 + $0x488] sm:$0xff] }
 0x13c   :  { %3585 = vmatpush2.bf16.msra.mxu0 %v5214_v3  ;;  %v5048_v3 = vcombine.low %v551_v50, %v555_v51  ;;  %v375_v51 = vld [vmem:[#allocation8 + $0x48] sm:$0xff] }
 0x13d   :  { %3626 = vmatpush2.bf16.msra.mxu1 %v5342_v4  ;;  %3586 = vmatprep.subr.bf16.mxu0 %v5207_v5  ;;  %v4913_v4 = vcombine.high %v415_v57, %v419_v58  ;;  %v5041_v5 = vcombine.high %v543_v60, %v547_v61  ;;  %v379_v52 = vld [vmem:[#allocation8 + $0x68] sm:$0xff] }
 0x13e   :  { %3627 = vmatprep.subr.bf16.mxu1 %v5335_v8  ;;  %v407_v8 = vld [vmem:[#allocation8 + $0x148] sm:$0xff] }
 0x13f   :  { %v4904_v22 = vcombine.low %v407_v8, %v411_v9  ;;  %v367_v58 = vld [vmem:[#allocation8 + $0x8] sm:$0xff] }
 0x140   :  { %3587 = vmatpush2.bf16.msra.mxu0 %v5206_v14  ;;  %v5040_v14 = vcombine.low %v543_v60, %v547_v61  ;;  %v371_v60 = vld [vmem:[#allocation8 + $0x28] sm:$0xff] }
 0x141   :  { %3628 = vmatpush2.bf16.msra.mxu1 %v5334_v15  ;;  %3588 = vmatprep.subr.bf16.mxu0 %v5199_v17  ;;  %v4905_v15 = vcombine.high %v407_v8, %v411_v9  ;;  %v5033_v17 = vcombine.high %v535_v10, %v539_v11  ;;  %v495_v61 = vld [vmem:[#allocation8 + $0x408] sm:$0xff] }
 0x142   :  { %3629 = vmatprep.subr.bf16.mxu1 %v5327_v18  ;;  %v399_v18 = vld [vmem:[#allocation8 + $0x108] sm:$0xff] }
 0x143   :  { %v4896_v25 = vcombine.low %v399_v18, %v403_v19  ;;  %v487_v9 = vld [vmem:[#allocation8 + $0x3c8] sm:$0xff] }
 0x144   :  { %3589 = vmatpush2.bf16.msra.mxu0 %v5198_v24  ;;  %v4897_v24 = vcombine.high %v399_v18, %v403_v19  ;;  %v491_v10 = vld [vmem:[#allocation8 + $0x3e8] sm:$0xff] }
 0x145   :  { %3630 = vmatpush2.bf16.msra.mxu1 %v5326_v27  ;;  %3590 = vmatprep.subr.bf16.mxu0 %v5191_v35  ;;  %v5025_v27 = vcombine.high %v527_v20, %v531_v21  ;;  %v395_v35 = vld [vmem:[#allocation8 + $0xe8] sm:$0xff] }
 0x146   :  { %3631 = vmatprep.subr.bf16.mxu1 %v5319_v36  ;;  %v519_v36 = vld [vmem:[#allocation8 + $0x4c8] sm:$0xff]  ;;  %v4889_v40 = vcombine.high %v391_v28, %v395_v35 }
 0x147   :  { %v5017_v41 = vcombine.high %v519_v36, %v523_v37  ;;  %v5016_v47 = vcombine.low %v519_v36, %v523_v37  ;;  %v615_v11 = vld [vmem:[#allocation8 + $0x7c8] sm:$0xff] }
 0x148   :  { %3591 = vmatpush2.bf16.msra.mxu0 %v5190_v42  ;;  %v383_v42 = vld [vmem:[#allocation8 + $0x88] sm:$0xff] }
 0x149   :  { %3632 = vmatpush2.bf16.msra.mxu1 %v5318_v43  ;;  %3592 = vmatprep.subr.bf16.mxu0 %v5183_v46  ;;  %v387_v43 = vld [vmem:[#allocation8 + $0xa8] sm:$0xff] }
 0x14a   :  { %3633 = vmatprep.subr.bf16.mxu1 %v5311_v32  ;;  %v515_v46 = vld [vmem:[#allocation8 + $0x4a8] sm:$0xff]  ;;  %v4888_v32 = vcombine.low %v391_v28, %v395_v35  ;;  %v4881_v48 = vcombine.high %v383_v42, %v387_v43  ;;  %v4880_v7 = vcombine.low %v383_v42, %v387_v43 }
 0x14b   :  { %v5009_v50 = vcombine.high %v511_v44, %v515_v46  ;;  %v479_v19 = vld [vmem:[#allocation8 + $0x388] sm:$0xff] }
 0x14c   :  { %3593 = vmatpush2.bf16.msra.mxu0 %v5182_v53  ;;  %v503_v53 = vld [vmem:[#allocation8 + $0x448] sm:$0xff] }
 0x14d   :  { %3634 = vmatpush2.bf16.msra.mxu1 %v5310_v54  ;;  %3644 = vmatprep.subr.bf16.mxu0 %v4921_v55  ;;  %v507_v54 = vld [vmem:[#allocation8 + $0x468] sm:$0xff]  ;;  %v5008_v55 = vcombine.low %v511_v44, %v515_v46 }
 0x14e   :  { %3685 = vmatprep.subr.bf16.mxu1 %v5049_v56  ;;  %v4873_v56 = vcombine.high %v375_v51, %v379_v52  ;;  %v5001_v57 = vcombine.high %v503_v53, %v507_v54  ;;  %v483_v20 = vld [vmem:[#allocation8 + $0x3a8] sm:$0xff] }
 0x14f   :  { %3595 = vmatmul.mubr.bf16.vlgmr.msra.gmra.mxu0 %v5870_v1  ;;  %v607_v21 = vld [vmem:[#allocation8 + $0x788] sm:$0xff] }
 0x150   :  { %3636 = vmatmul.mubr.bf16.vlgmr.msra.gmra.mxu1 %v5868_v6  ;;  %3645 = vmatpush1.bf16.msra.mxu0 %v4920_v0  ;;  %v499_v0 = vld [vmem:[#allocation8 + $0x428] sm:$0xff] }
 0x151   :  { %3676 = vmatprep.mubr.bf16.mxu0 %v5832_v62  ;;  %3686 = vmatpush1.bf16.msra.mxu1 %v5048_v3  ;;  %v4872_v3 = vcombine.low %v375_v51, %v379_v52  ;;  %v4993_v8 = vcombine.high %v495_v61, %v499_v0  ;;  %v471_v35 = vld [vmem:[#allocation8 + $0x348] sm:$0xff] }
 0x152   :  { %3717 = vmatprep.mubr.bf16.mxu1 %v5834_v63  ;;  %3646 = vmatprep.subr.bf16.mxu0 %v4913_v4  ;;  %v5000_v4 = vcombine.low %v503_v53, %v507_v54  ;;  %v475_v36 = vld [vmem:[#allocation8 + $0x368] sm:$0xff] }
 0x153   :  { %3687 = vmatprep.subr.bf16.mxu1 %v5041_v5  ;;  %v4865_v5 = vcombine.high %v367_v58, %v371_v60  ;;  %v599_v37 = vld [vmem:[#allocation8 + $0x748] sm:$0xff] }
 0x154   :  { %3647 = vmatpush1.bf16.msra.mxu0 %v4912_v12  ;;  %v619_v12 = vld [vmem:[#allocation8 + $0x7e8] sm:$0xff] }
 0x155   :  { %3688 = vmatpush1.bf16.msra.mxu1 %v5040_v14  ;;  %3648 = vmatprep.subr.bf16.mxu0 %v4905_v15  ;;  %v4864_v14 = vcombine.low %v367_v58, %v371_v60  ;;  %v4992_v15 = vcombine.low %v495_v61, %v499_v0  ;;  %v5113_v18 = vcombine.high %v615_v11, %v619_v12  ;;  %v463_v43 = vld [vmem:[#allocation8 + $0x308] sm:$0xff] }
 0x156   :  { %3689 = vmatprep.subr.bf16.mxu1 %v5033_v17  ;;  %v4985_v17 = vcombine.high %v487_v9, %v491_v10  ;;  %v467_v44 = vld [vmem:[#allocation8 + $0x328] sm:$0xff] }
 0x157   :  { %v591_v46 = vld [vmem:[#allocation8 + $0x708] sm:$0xff] }
 0x158   :  { %3649 = vmatpush1.bf16.msra.mxu0 %v4904_v22  ;;  %v611_v22 = vld [vmem:[#allocation8 + $0x7a8] sm:$0xff] }
 0x159   :  { %3690 = vmatpush1.bf16.msra.mxu1 %v5032_v23  ;;  %3650 = vmatprep.subr.bf16.mxu0 %v4897_v24  ;;  %v4984_v23 = vcombine.low %v487_v9, %v491_v10  ;;  %v5112_v24 = vcombine.low %v615_v11, %v619_v12  ;;  %v5105_v28 = vcombine.high %v607_v21, %v611_v22  ;;  %v455_v52 = vld [vmem:[#allocation8 + $0x2c8] sm:$0xff] }
 0x15a   :  { %3691 = vmatprep.subr.bf16.mxu1 %v5025_v27  ;;  %v4977_v27 = vcombine.high %v479_v19, %v483_v20  ;;  %v459_v53 = vld [vmem:[#allocation8 + $0x2e8] sm:$0xff] }
 0x15b   :  { %v583_v54 = vld [vmem:[#allocation8 + $0x6c8] sm:$0xff] }
 0x15c   :  { %3651 = vmatpush1.bf16.msra.mxu0 %v4896_v25  ;;  %v603_v25 = vld [vmem:[#allocation8 + $0x768] sm:$0xff] }
 0x15d   :  { %3692 = vmatpush1.bf16.msra.mxu1 %v5024_v39  ;;  %3652 = vmatprep.subr.bf16.mxu0 %v4889_v40  ;;  %v4976_v39 = vcombine.low %v479_v19, %v483_v20  ;;  %v5104_v40 = vcombine.low %v607_v21, %v611_v22  ;;  %v5097_v42 = vcombine.high %v599_v37, %v603_v25  ;;  %v447_v60 = vld [vmem:[#allocation8 + $0x288] sm:$0xff] }
 0x15e   :  { %3693 = vmatprep.subr.bf16.mxu1 %v5017_v41  ;;  %v4969_v41 = vcombine.high %v471_v35, %v475_v36  ;;  %v451_v61 = vld [vmem:[#allocation8 + $0x2a8] sm:$0xff] }
 0x15f   :  { %v575_v0 = vld [vmem:[#allocation8 + $0x688] sm:$0xff] }
 0x160   :  { %3653 = vmatpush1.bf16.msra.mxu0 %v4888_v32  ;;  %v595_v32 = vld [vmem:[#allocation8 + $0x728] sm:$0xff] }
 0x161   :  { %3694 = vmatpush1.bf16.msra.mxu1 %v5016_v47  ;;  %3654 = vmatprep.subr.bf16.mxu0 %v4881_v48  ;;  %v4968_v47 = vcombine.low %v471_v35, %v475_v36  ;;  %v5096_v48 = vcombine.low %v599_v37, %v603_v25  ;;  %v5089_v51 = vcombine.high %v591_v46, %v595_v32  ;;  %v439_v10 = vld [vmem:[#allocation8 + $0x248] sm:$0xff] }
 0x162   :  { %3695 = vmatprep.subr.bf16.mxu1 %v5009_v50  ;;  %v4961_v50 = vcombine.high %v463_v43, %v467_v44  ;;  %v443_v11 = vld [vmem:[#allocation8 + $0x268] sm:$0xff] }
 0x163   :  { %v567_v12 = vld [vmem:[#allocation8 + $0x648] sm:$0xff] }
 0x164   :  { %3655 = vmatpush1.bf16.msra.mxu0 %v4880_v7  ;;  %v587_v7 = vld [vmem:[#allocation8 + $0x6e8] sm:$0xff] }
 0x165   :  { %3696 = vmatpush1.bf16.msra.mxu1 %v5008_v55  ;;  %3656 = vmatprep.subr.bf16.mxu0 %v4873_v56  ;;  %v4960_v55 = vcombine.low %v463_v43, %v467_v44  ;;  %v5088_v56 = vcombine.low %v591_v46, %v595_v32  ;;  %v5081_v58 = vcombine.high %v583_v54, %v587_v7  ;;  %v431_v20 = vld [vmem:[#allocation8 + $0x208] sm:$0xff] }
 0x166   :  { %3697 = vmatprep.subr.bf16.mxu1 %v5001_v57  ;;  %v4953_v57 = vcombine.high %v455_v52, %v459_v53  ;;  %v435_v21 = vld [vmem:[#allocation8 + $0x228] sm:$0xff] }
 0x167   :  { %v559_v22 = vld [vmem:[#allocation8 + $0x608] sm:$0xff] }
 0x168   :  { %3657 = vmatpush1.bf16.msra.mxu0 %v4872_v3  ;;  %v579_v3 = vld [vmem:[#allocation8 + $0x6a8] sm:$0xff] }
 0x169   :  { %3698 = vmatpush1.bf16.msra.mxu1 %v5000_v4  ;;  %3658 = vmatprep.subr.bf16.mxu0 %v4865_v5  ;;  %v4952_v4 = vcombine.low %v455_v52, %v459_v53  ;;  %v5080_v5 = vcombine.low %v583_v54, %v587_v7  ;;  %v5073_v9 = vcombine.high %v575_v0, %v579_v3  ;;  %v679_v36 = vld [vmem:[#allocation8 + $0x9c8] sm:$0xff] }
 0x16a   :  { %3699 = vmatprep.subr.bf16.mxu1 %v4993_v8  ;;  %v4945_v8 = vcombine.high %v447_v60, %v451_v61  ;;  %v683_v37 = vld [vmem:[#allocation8 + $0x9e8] sm:$0xff] }
 0x16b   :  { %v807_v25 = vld [vmem:[#allocation8 + $0xdc8] sm:$0xff]  ;;  %v5176_v32 = vcombine.low %v679_v36, %v683_v37 }
 0x16c   :  { %3659 = vmatpush1.bf16.msra.mxu0 %v4864_v14  ;;  %v571_v14 = vld [vmem:[#allocation8 + $0x668] sm:$0xff] }
 0x16d   :  { %3700 = vmatpush1.bf16.msra.mxu1 %v4992_v15  ;;  %3660 = vmatprep.subr.bf16.mxu0 %v4985_v17  ;;  %v4944_v15 = vcombine.low %v447_v60, %v451_v61  ;;  %v5072_v17 = vcombine.low %v575_v0, %v579_v3  ;;  %v5065_v19 = vcombine.high %v567_v12, %v571_v14  ;;  %v671_v44 = vld [vmem:[#allocation8 + $0x988] sm:$0xff] }
 0x16e   :  { %3701 = vmatprep.subr.bf16.mxu1 %v5113_v18  ;;  %v4937_v18 = vcombine.high %v439_v10, %v443_v11  ;;  %v675_v46 = vld [vmem:[#allocation8 + $0x9a8] sm:$0xff] }
 0x16f   :  { %v663_v52 = vld [vmem:[#allocation8 + $0x948] sm:$0xff] }
 0x170   :  { %3661 = vmatpush2.bf16.msra.mxu0 %v4984_v23  ;;  %v563_v23 = vld [vmem:[#allocation8 + $0x628] sm:$0xff] }
 0x171   :  { %3702 = vmatpush2.bf16.msra.mxu1 %v5112_v24  ;;  %3662 = vmatprep.subr.bf16.mxu0 %v4977_v27  ;;  %v4936_v24 = vcombine.low %v439_v10, %v443_v11  ;;  %v5064_v27 = vcombine.low %v567_v12, %v571_v14  ;;  %v5057_v35 = vcombine.high %v559_v22, %v563_v23  ;;  %v667_v53 = vld [vmem:[#allocation8 + $0x968] sm:$0xff] }
 0x172   :  { %3703 = vmatprep.subr.bf16.mxu1 %v5105_v28  ;;  %v4929_v28 = vcombine.high %v431_v20, %v435_v21  ;;  %v791_v7 = vld [vmem:[#allocation8 + $0xd48] sm:$0xff] }
 0x173   :  { %v655_v61 = vld [vmem:[#allocation8 + $0x908] sm:$0xff] }
 0x174   :  { %3663 = vmatpush2.bf16.msra.mxu0 %v4976_v39  ;;  %v811_v39 = vld [vmem:[#allocation8 + $0xde8] sm:$0xff] }
 0x175   :  { %3704 = vmatpush2.bf16.msra.mxu1 %v5104_v40  ;;  %3664 = vmatprep.subr.bf16.mxu0 %v4969_v41  ;;  %v4928_v40 = vcombine.low %v431_v20, %v435_v21  ;;  %v5056_v41 = vcombine.low %v559_v22, %v563_v23  ;;  %v5305_v43 = vcombine.high %v807_v25, %v811_v39  ;;  %v659_v0 = vld [vmem:[#allocation8 + $0x928] sm:$0xff] }
 0x176   :  { %3705 = vmatprep.subr.bf16.mxu1 %v5097_v42  ;;  %v5177_v42 = vcombine.high %v679_v36, %v683_v37  ;;  %v783_v3 = vld [vmem:[#allocation8 + $0xd08] sm:$0xff] }
 0x177   :  { %v647_v11 = vld [vmem:[#allocation8 + $0x8c8] sm:$0xff] }
 0x178   :  { %3665 = vmatpush2.bf16.msra.mxu0 %v4968_v47  ;;  %v799_v47 = vld [vmem:[#allocation8 + $0xd88] sm:$0xff] }
 0x179   :  { %3706 = vmatpush2.bf16.msra.mxu1 %v5096_v48  ;;  %3666 = vmatprep.subr.bf16.mxu0 %v4961_v50  ;;  %v803_v48 = vld [vmem:[#allocation8 + $0xda8] sm:$0xff]  ;;  %v5304_v50 = vcombine.low %v807_v25, %v811_v39 }
 0x17a   :  { %3707 = vmatprep.subr.bf16.mxu1 %v5089_v51  ;;  %v5169_v51 = vcombine.high %v671_v44, %v675_v46  ;;  %v5297_v54 = vcombine.high %v799_v47, %v803_v48  ;;  %v651_v12 = vld [vmem:[#allocation8 + $0x8e8] sm:$0xff] }
 0x17b   :  { %v775_v14 = vld [vmem:[#allocation8 + $0xcc8] sm:$0xff] }
 0x17c   :  { %3667 = vmatpush2.bf16.msra.mxu0 %v4960_v55  ;;  %v795_v55 = vld [vmem:[#allocation8 + $0xd68] sm:$0xff] }
 0x17d   :  { %3708 = vmatpush2.bf16.msra.mxu1 %v5088_v56  ;;  %3668 = vmatprep.subr.bf16.mxu0 %v4953_v57  ;;  %v5168_v56 = vcombine.low %v671_v44, %v675_v46  ;;  %v5296_v57 = vcombine.low %v799_v47, %v803_v48  ;;  %v5289_v60 = vcombine.high %v791_v7, %v795_v55  ;;  %v639_v21 = vld [vmem:[#allocation8 + $0x888] sm:$0xff] }
 0x17e   :  { %3709 = vmatprep.subr.bf16.mxu1 %v5081_v58  ;;  %v5161_v58 = vcombine.high %v663_v52, %v667_v53  ;;  %v643_v22 = vld [vmem:[#allocation8 + $0x8a8] sm:$0xff] }
 0x17f   :  { %v767_v23 = vld [vmem:[#allocation8 + $0xc88] sm:$0xff] }
 0x180   :  { %3669 = vmatpush2.bf16.msra.mxu0 %v4952_v4  ;;  %v787_v4 = vld [vmem:[#allocation8 + $0xd28] sm:$0xff] }
 0x181   :  { %3710 = vmatpush2.bf16.msra.mxu1 %v5080_v5  ;;  %3670 = vmatprep.subr.bf16.mxu0 %v4945_v8  ;;  %v5160_v5 = vcombine.low %v663_v52, %v667_v53  ;;  %v5288_v8 = vcombine.low %v791_v7, %v795_v55  ;;  %v5281_v10 = vcombine.high %v783_v3, %v787_v4  ;;  %v631_v37 = vld [vmem:[#allocation8 + $0x848] sm:$0xff] }
 0x182   :  { %3711 = vmatprep.subr.bf16.mxu1 %v5073_v9  ;;  %v5153_v9 = vcombine.high %v655_v61, %v659_v0  ;;  %v635_v25 = vld [vmem:[#allocation8 + $0x868] sm:$0xff] }
 0x183   :  { %v759_v39 = vld [vmem:[#allocation8 + $0xc48] sm:$0xff] }
 0x184   :  { %3671 = vmatpush2.bf16.msra.mxu0 %v4944_v15  ;;  %v779_v15 = vld [vmem:[#allocation8 + $0xce8] sm:$0xff] }
 0x185   :  { %3712 = vmatpush2.bf16.msra.mxu1 %v5072_v17  ;;  %3672 = vmatprep.subr.bf16.mxu0 %v4937_v18  ;;  %v5152_v17 = vcombine.low %v655_v61, %v659_v0  ;;  %v5280_v18 = vcombine.low %v783_v3, %v787_v4  ;;  %v5273_v20 = vcombine.high %v775_v14, %v779_v15  ;;  %v623_v46 = vld [vmem:[#allocation8 + $0x808] sm:$0xff] }
 0x186   :  { %3713 = vmatprep.subr.bf16.mxu1 %v5065_v19  ;;  %v5145_v19 = vcombine.high %v647_v11, %v651_v12  ;;  %v751_v47 = vld [vmem:[#allocation8 + $0xc08] sm:$0xff] }
 0x187   :  { %v755_v48 = vld [vmem:[#allocation8 + $0xc28] sm:$0xff] }
 0x188   :  { %3673 = vmatpush2.bf16.msra.mxu0 %v4936_v24  ;;  %v771_v24 = vld [vmem:[#allocation8 + $0xca8] sm:$0xff]  ;;  %v5249_v53 = vcombine.high %v751_v47, %v755_v48 }
 0x189   :  { %3714 = vmatpush2.bf16.msra.mxu1 %v5064_v27  ;;  %3674 = vmatprep.subr.bf16.mxu0 %v4929_v28  ;;  %v5144_v27 = vcombine.low %v647_v11, %v651_v12  ;;  %v5272_v28 = vcombine.low %v775_v14, %v779_v15  ;;  %v5265_v36 = vcombine.high %v767_v23, %v771_v24  ;;  %v747_v7 = vld [vmem:[#allocation8 + $0xbe8] sm:$0xff] }
 0x18a   :  { %3715 = vmatprep.subr.bf16.mxu1 %v5057_v35  ;;  %v5137_v35 = vcombine.high %v639_v21, %v643_v22  ;;  %v871_v55 = vld [vmem:[#allocation8 + $0xfc8] sm:$0xff] }
 0x18b   :  { %v735_v0 = vld [vmem:[#allocation8 + $0xb88] sm:$0xff] }
 0x18c   :  { %3675 = vmatpush2.bf16.msra.mxu0 %v4928_v40  ;;  %v763_v40 = vld [vmem:[#allocation8 + $0xc68] sm:$0xff] }
 0x18d   :  { %3716 = vmatpush2.bf16.msra.mxu1 %v5056_v41  ;;  %3726 = vmatprep.subr.bf16.mxu0 %v5177_v42  ;;  %v5136_v41 = vcombine.low %v639_v21, %v643_v22  ;;  %v5264_v42 = vcombine.low %v767_v23, %v771_v24  ;;  %v5257_v44 = vcombine.high %v759_v39, %v763_v40  ;;  %v739_v3 = vld [vmem:[#allocation8 + $0xba8] sm:$0xff] }
 0x18e   :  { %3767 = vmatprep.subr.bf16.mxu1 %v5305_v43  ;;  %v5129_v43 = vcombine.high %v631_v37, %v635_v25  ;;  %v863_v4 = vld [vmem:[#allocation8 + $0xf88] sm:$0xff] }
 0x18f   :  { %3677 = vmatmul.mubr.bf16.vlgmr.msra.gmra.mxu0 %v5842_v2  ;;  %v727_v12 = vld [vmem:[#allocation8 + $0xb48] sm:$0xff] }
 0x190   :  { %3718 = vmatmul.mubr.bf16.vlgmr.msra.gmra.mxu1 %v5830_v59  ;;  %3727 = vmatpush1.bf16.msra.mxu0 %v5176_v32  ;;  %v627_v32 = vld [vmem:[#allocation8 + $0x828] sm:$0xff] }
 0x191   :  { %3758 = vmatprep.mubr.bf16.mxu0 %v5852_v26  ;;  %3768 = vmatpush1.bf16.msra.mxu1 %v5304_v50  ;;  %v5128_v50 = vcombine.low %v631_v37, %v635_v25  ;;  %v5121_v52 = vcombine.high %v623_v46, %v627_v32  ;;  %v731_v14 = vld [vmem:[#allocation8 + $0xb68] sm:$0xff] }
 0x192   :  { %3799 = vmatprep.mubr.bf16.mxu1 %v5854_v38  ;;  %3728 = vmatprep.subr.bf16.mxu0 %v5169_v51  ;;  %v5256_v51 = vcombine.low %v759_v39, %v763_v40  ;;  %v855_v15 = vld [vmem:[#allocation8 + $0xf48] sm:$0xff] }
 0x193   :  { %3769 = vmatprep.subr.bf16.mxu1 %v5297_v54  ;;  %v743_v54 = vld [vmem:[#allocation8 + $0xbc8] sm:$0xff] }
 0x194   :  { %3729 = vmatpush1.bf16.msra.mxu0 %v5168_v56  ;;  %v875_v56 = vld [vmem:[#allocation8 + $0xfe8] sm:$0xff] }
 0x195   :  { %3770 = vmatpush1.bf16.msra.mxu1 %v5296_v57  ;;  %3730 = vmatprep.subr.bf16.mxu0 %v5161_v58  ;;  %v5120_v57 = vcombine.low %v623_v46, %v627_v32  ;;  %v5248_v58 = vcombine.low %v751_v47, %v755_v48  ;;  %v5369_v61 = vcombine.high %v871_v55, %v875_v56  ;;  %v719_v22 = vld [vmem:[#allocation8 + $0xb08] sm:$0xff] }
 0x196   :  { %3771 = vmatprep.subr.bf16.mxu1 %v5289_v60  ;;  %v5241_v60 = vcombine.high %v743_v54, %v747_v7  ;;  %v723_v23 = vld [vmem:[#allocation8 + $0xb28] sm:$0xff] }
 0x197   :  { %v847_v24 = vld [vmem:[#allocation8 + $0xf08] sm:$0xff] }
 0x198   :  { %3731 = vmatpush1.bf16.msra.mxu0 %v5160_v5  ;;  %v867_v5 = vld [vmem:[#allocation8 + $0xfa8] sm:$0xff] }
 0x199   :  { %3772 = vmatpush1.bf16.msra.mxu1 %v5288_v8  ;;  %3732 = vmatprep.subr.bf16.mxu0 %v5153_v9  ;;  %v5240_v8 = vcombine.low %v743_v54, %v747_v7  ;;  %v5368_v9 = vcombine.low %v871_v55, %v875_v56  ;;  %v5361_v11 = vcombine.high %v863_v4, %v867_v5  ;;  %v711_v25 = vld [vmem:[#allocation8 + $0xac8] sm:$0xff] }
 0x19a   :  { %3773 = vmatprep.subr.bf16.mxu1 %v5281_v10  ;;  %v5233_v10 = vcombine.high %v735_v0, %v739_v3  ;;  %v715_v39 = vld [vmem:[#allocation8 + $0xae8] sm:$0xff] }
 0x19b   :  { %v839_v40 = vld [vmem:[#allocation8 + $0xec8] sm:$0xff] }
 0x19c   :  { %3733 = vmatpush1.bf16.msra.mxu0 %v5152_v17  ;;  %v859_v17 = vld [vmem:[#allocation8 + $0xf68] sm:$0xff] }
 0x19d   :  { %3774 = vmatpush1.bf16.msra.mxu1 %v5280_v18  ;;  %3734 = vmatprep.subr.bf16.mxu0 %v5145_v19  ;;  %v5232_v18 = vcombine.low %v735_v0, %v739_v3  ;;  %v5360_v19 = vcombine.low %v863_v4, %v867_v5  ;;  %v5353_v21 = vcombine.high %v855_v15, %v859_v17  ;;  %v703_v32 = vld [vmem:[#allocation8 + $0xa88] sm:$0xff] }
 0x19e   :  { %3775 = vmatprep.subr.bf16.mxu1 %v5273_v20  ;;  %v5225_v20 = vcombine.high %v727_v12, %v731_v14  ;;  %v707_v47 = vld [vmem:[#allocation8 + $0xaa8] sm:$0xff] }
 0x19f   :  { %v831_v48 = vld [vmem:[#allocation8 + $0xe88] sm:$0xff] }
 0x1a0   :  { %3735 = vmatpush1.bf16.msra.mxu0 %v5144_v27  ;;  %v851_v27 = vld [vmem:[#allocation8 + $0xf28] sm:$0xff] }
 0x1a1   :  { %3776 = vmatpush1.bf16.msra.mxu1 %v5272_v28  ;;  %3736 = vmatprep.subr.bf16.mxu0 %v5137_v35  ;;  %v5224_v28 = vcombine.low %v727_v12, %v731_v14  ;;  %v5352_v35 = vcombine.low %v855_v15, %v859_v17  ;;  %v5345_v37 = vcombine.high %v847_v24, %v851_v27  ;;  %v695_v7 = vld [vmem:[#allocation8 + $0xa48] sm:$0xff]  ;;  %v424_v14 = vld [vmem:[#allocation8 + $0x1d0] sm:$0xff] }
 0x1a2   :  { %3777 = vmatprep.subr.bf16.mxu1 %v5265_v36  ;;  %v5217_v36 = vcombine.high %v719_v22, %v723_v23  ;;  %v699_v55 = vld [vmem:[#allocation8 + $0xa68] sm:$0xff]  ;;  %v428_v15 = vld [vmem:[#allocation8 + $0x1f0] sm:$0xff] }
 0x1a3   :  { %v823_v56 = vld [vmem:[#allocation8 + $0xe48] sm:$0xff]  ;;  %v552_v17 = vld [vmem:[#allocation8 + $0x5d0] sm:$0xff] }
 0x1a4   :  { %3737 = vmatpush1.bf16.msra.mxu0 %v5136_v41  ;;  %v843_v41 = vld [vmem:[#allocation8 + $0xee8] sm:$0xff] }
 0x1a5   :  { %3778 = vmatpush1.bf16.msra.mxu1 %v5264_v42  ;;  %3738 = vmatprep.subr.bf16.mxu0 %v5129_v43  ;;  %v5216_v42 = vcombine.low %v719_v22, %v723_v23  ;;  %v5344_v43 = vcombine.low %v847_v24, %v851_v27  ;;  %v5337_v46 = vcombine.high %v839_v40, %v843_v41  ;;  %v687_v3 = vld [vmem:[#allocation8 + $0xa08] sm:$0xff]  ;;  %v5880_v22 = vld [vmem:[#allocation10] sm:$0xff]  ;;  %v416_v24 = vld [vmem:[#allocation8 + $0x190] sm:$0xff] }
 0x1a6   :  { %3779 = vmatprep.subr.bf16.mxu1 %v5257_v44  ;;  %v5209_v44 = vcombine.high %v711_v25, %v715_v39  ;;  %v691_v4 = vld [vmem:[#allocation8 + $0xa28] sm:$0xff]  ;;  %v420_v27 = vld [vmem:[#allocation8 + $0x1b0] sm:$0xff] }
 0x1a7   :  { %v815_v5 = vld [vmem:[#allocation8 + $0xe08] sm:$0xff] }
 0x1a8   :  { %3739 = vmatpush1.bf16.msra.mxu0 %v5128_v50  ;;  %v835_v50 = vld [vmem:[#allocation8 + $0xea8] sm:$0xff] }
 0x1a9   :  { %3780 = vmatpush1.bf16.msra.mxu1 %v5256_v51  ;;  %3740 = vmatprep.subr.bf16.mxu0 %v5121_v52  ;;  %v5208_v51 = vcombine.low %v711_v25, %v715_v39  ;;  %v5336_v52 = vcombine.low %v839_v40, %v843_v41  ;;  %v5329_v54 = vcombine.high %v831_v48, %v835_v50  ;;  %v408_v41 = vld [vmem:[#allocation8 + $0x150] sm:$0xff] }
 0x1aa   :  { %3781 = vmatprep.subr.bf16.mxu1 %v5249_v53  ;;  %v5201_v53 = vcombine.high %v703_v32, %v707_v47  ;;  %v887_v39 = vrot.slane %v5880_v22, %v103_v33  ;;  %v4915_v40 = vcombine.high %v416_v24, %v420_v27 }
 0x1ac   :  { %3741 = vmatpush1.bf16.msra.mxu0 %v5120_v57  ;;  %v827_v57 = vld [vmem:[#allocation8 + $0xe68] sm:$0xff] }
 0x1ad   :  { %3782 = vmatpush1.bf16.msra.mxu1 %v5248_v58  ;;  %3742 = vmatprep.subr.bf16.mxu0 %v5241_v60  ;;  %v5200_v58 = vcombine.low %v703_v32, %v707_v47  ;;  %v5328_v60 = vcombine.low %v831_v48, %v835_v50  ;;  %v5321_v0 = vcombine.high %v823_v56, %v827_v57  ;;  %v536_v32 = vld [vmem:[#allocation8 + $0x550] sm:$0xff] }
 0x1ae   :  { %3783 = vmatprep.subr.bf16.mxu1 %v5369_v61  ;;  %v5193_v61 = vcombine.high %v695_v7, %v699_v55  ;;  %v4914_v48 = vcombine.low %v416_v24, %v420_v27  ;;  %v512_v24 = vld [vmem:[#allocation8 + $0x490] sm:$0xff] }
 0x1af   :  { %v516_v27 = vld [vmem:[#allocation8 + $0x4b0] sm:$0xff] }
 0x1b0   :  { %3743 = vmatpush2.bf16.msra.mxu0 %v5240_v8  ;;  %v819_v8 = vld [vmem:[#allocation8 + $0xe28] sm:$0xff] }
 0x1b1   :  { %3784 = vmatpush2.bf16.msra.mxu1 %v5368_v9  ;;  %3744 = vmatprep.subr.bf16.mxu0 %v5233_v10  ;;  %v5192_v9 = vcombine.low %v695_v7, %v699_v55  ;;  %v5320_v10 = vcombine.low %v823_v56, %v827_v57  ;;  %v5313_v12 = vcombine.high %v815_v5, %v819_v8  ;;  %v400_v55 = vld [vmem:[#allocation8 + $0x110] sm:$0xff] }
 0x1b2   :  { %3785 = vmatprep.subr.bf16.mxu1 %v5361_v11  ;;  %v5185_v11 = vcombine.high %v687_v3, %v691_v4  ;;  %v404_v56 = vld [vmem:[#allocation8 + $0x130] sm:$0xff] }
 0x1b4   :  { %3745 = vmatpush2.bf16.msra.mxu0 %v5232_v18  ;;  %v556_v18 = vld [vmem:[#allocation8 + $0x5f0] sm:$0xff] }
 0x1b5   :  { %3786 = vmatpush2.bf16.msra.mxu1 %v5360_v19  ;;  %3746 = vmatprep.subr.bf16.mxu0 %v5225_v20  ;;  %v5184_v19 = vcombine.low %v687_v3, %v691_v4  ;;  %v5312_v20 = vcombine.low %v815_v5, %v819_v8  ;;  %v5051_v23 = vcombine.high %v552_v17, %v556_v18 }
 0x1b6   :  { %3787 = vmatprep.subr.bf16.mxu1 %v5353_v21  ;;  %v4923_v21 = vcombine.high %v424_v14, %v428_v15  ;;  %v5050_v25 = vcombine.low %v552_v17, %v556_v18  ;;  %v4898_v17 = vcombine.low %v400_v55, %v404_v56 }
 0x1b8   :  { %3747 = vmatpush2.bf16.msra.mxu0 %v5224_v28  ;;  %v4922_v28 = vcombine.low %v424_v14, %v428_v15  ;;  %v520_v14 = vld [vmem:[#allocation8 + $0x4d0] sm:$0xff] }
 0x1b9   :  { %3788 = vmatpush2.bf16.msra.mxu1 %v5352_v35  ;;  %3748 = vmatprep.subr.bf16.mxu0 %v5217_v36  ;;  %v883_v35 = vrot.slane %v5880_v22, %v99_v30  ;;  %v544_v36 = vld [vmem:[#allocation8 + $0x590] sm:$0xff] }
 0x1ba   :  { %3789 = vmatprep.subr.bf16.mxu1 %v5345_v37  ;;  %v548_v37 = vld [vmem:[#allocation8 + $0x5b0] sm:$0xff] }
 0x1bb   :  { %v540_v30 = vld [vmem:[#allocation8 + $0x570] sm:$0xff] }
 0x1bc   :  { %3749 = vmatpush2.bf16.msra.mxu0 %v5216_v42  ;;  %v412_v42 = vld [vmem:[#allocation8 + $0x170] sm:$0xff]  ;;  %v5035_v7 = vcombine.high %v536_v32, %v540_v30  ;;  %v5034_v8 = vcombine.low %v536_v32, %v540_v30 }
 0x1bd   :  { %3790 = vmatpush2.bf16.msra.mxu1 %v5344_v43  ;;  %3750 = vmatprep.subr.bf16.mxu0 %v5209_v44  ;;  %v4906_v3 = vcombine.low %v408_v41, %v412_v42  ;;  %v524_v15 = vld [vmem:[#allocation8 + $0x4f0] sm:$0xff] }
 0x1be   :  { %3791 = vmatprep.subr.bf16.mxu1 %v5337_v46  ;;  %v5043_v46 = vcombine.high %v544_v36, %v548_v37  ;;  %v368_v32 = vld [vmem:[#allocation8 + $0x10] sm:$0xff] }
 0x1bf   :  { %v372_v30 = vld [vmem:[#allocation8 + $0x30] sm:$0xff] }
 0x1c0   :  { %3751 = vmatpush2.bf16.msra.mxu0 %v5208_v51  ;;  %v5042_v51 = vcombine.low %v544_v36, %v548_v37  ;;  %v5011_v37 = vcombine.high %v512_v24, %v516_v27 }
 0x1c1   :  { %3792 = vmatpush2.bf16.msra.mxu1 %v5336_v52  ;;  %3752 = vmatprep.subr.bf16.mxu0 %v5201_v53  ;;  %v4907_v52 = vcombine.high %v408_v41, %v412_v42  ;;  %v508_v41 = vld [vmem:[#allocation8 + $0x470] sm:$0xff] }
 0x1c2   :  { %3793 = vmatprep.subr.bf16.mxu1 %v5329_v54 }
 0x1c4   :  { %3753 = vmatpush2.bf16.msra.mxu0 %v5200_v58 }
 0x1c5   :  { %3794 = vmatpush2.bf16.msra.mxu1 %v5328_v60  ;;  %3754 = vmatprep.subr.bf16.mxu0 %v5193_v61  ;;  %v528_v60 = vld [vmem:[#allocation8 + $0x510] sm:$0xff] }
 0x1c6   :  { %3795 = vmatprep.subr.bf16.mxu1 %v5321_v0  ;;  %v532_v61 = vld [vmem:[#allocation8 + $0x530] sm:$0xff] }
 0x1c7   :  { %v5026_v18 = vcombine.low %v528_v60, %v532_v61 }
 0x1c8   :  { %3755 = vmatpush2.bf16.msra.mxu0 %v5192_v9  ;;  %v4899_v9 = vcombine.high %v400_v55, %v404_v56  ;;  %v616_v55 = vld [vmem:[#allocation8 + $0x7d0] sm:$0xff] }
 0x1c9   :  { %3796 = vmatpush2.bf16.msra.mxu1 %v5320_v10  ;;  %3756 = vmatprep.subr.bf16.mxu0 %v5185_v11  ;;  %v5027_v10 = vcombine.high %v528_v60, %v532_v61  ;;  %v392_v11 = vld [vmem:[#allocation8 + $0xd0] sm:$0xff] }
 0x1ca   :  { %3797 = vmatprep.subr.bf16.mxu1 %v5313_v12  ;;  %v396_v12 = vld [vmem:[#allocation8 + $0xf0] sm:$0xff] }
 0x1cb   :  { %v620_v56 = vld [vmem:[#allocation8 + $0x7f0] sm:$0xff] }
 0x1cc   :  { %3757 = vmatpush2.bf16.msra.mxu0 %v5184_v19  ;;  %v4891_v19 = vcombine.high %v392_v11, %v396_v12  ;;  %v5115_v61 = vcombine.high %v616_v55, %v620_v56 }
 0x1cd   :  { %3798 = vmatpush2.bf16.msra.mxu1 %v5312_v20  ;;  %3808 = vmatprep.subr.bf16.mxu0 %v4923_v21  ;;  %v5019_v20 = vcombine.high %v520_v14, %v524_v15  ;;  %v384_v21 = vld [vmem:[#allocation8 + $0x90] sm:$0xff] }
 0x1ce   :  { %3849 = vmatprep.subr.bf16.mxu1 %v5051_v23  ;;  %v388_v23 = vld [vmem:[#allocation8 + $0xb0] sm:$0xff] }
 0x1cf   :  { %3759 = vmatmul.mubr.bf16.vlgmr.msra.gmra.mxu0 %v5870_v1  ;;  %v3514_v43 = vpop.f32.mrf.mxu0  ;;  %v4883_v36 = vcombine.high %v384_v21, %v388_v23  ;;  %v4882_v42 = vcombine.low %v384_v21, %v388_v23 }
 0x1d0   :  { %v3555_v44 = vpop.f32.mrf.mxu1  ;;  %3800 = vmatmul.mubr.bf16.vlgmr.msra.gmra.mxu1 %v5868_v6  ;;  %v3515_v47 = vadd.f32 %v3514_v43, %v883_v35  ;;  %3809 = vmatpush1.bf16.msra.mxu0 %v4922_v28  ;;  %v4890_v28 = vcombine.low %v392_v11, %v396_v12  ;;  %v5018_v35 = vcombine.low %v520_v14, %v524_v15  ;;  %v472_v14 = vld [vmem:[#allocation8 + $0x350] sm:$0xff] }
 0x1d1   :  { %3840 = vmatprep.mubr.bf16.mxu0 %v5832_v62  ;;  %3850 = vmatpush1.bf16.msra.mxu1 %v5050_v25  ;;  %v3516_v50 = vpop.f32.mrf.mxu0  ;;  %v376_v25 = vld [vmem:[#allocation8 + $0x50] sm:$0xff]  ;;  %v5010_v43 = vcombine.low %v512_v24, %v516_v27 }
 0x1d2   :  { %v3557_v33 = vpop.f32.mrf.mxu1  ;;  %v5891_v53 = vadd.f32 %v3555_v44, %v3515_v47  ;;  %3881 = vmatprep.mubr.bf16.mxu1 %v5834_v63  ;;  %v3517_v54 = vadd.f32 %v3516_v50, %v887_v39  ;;  %3810 = vmatprep.subr.bf16.mxu0 %v4915_v40  ;;  %v380_v39 = vld [vmem:[#allocation8 + $0x70] sm:$0xff] }
 0x1d3   :  { %3851 = vmatprep.subr.bf16.mxu1 %v5043_v46  ;;  %v3518_v57 = vpop.f32.mrf.mxu0  ;;  %v504_v40 = vld [vmem:[#allocation8 + $0x450] sm:$0xff]  ;;  %v4875_v44 = vcombine.high %v376_v25, %v380_v39  ;;  %v4874_v50 = vcombine.low %v376_v25, %v380_v39 }
 0x1d4   :  { %v3559_v58 = vpop.f32.mrf.mxu1  ;;  %v5894_v0 = vadd.f32 %v3557_v33, %v3517_v54  ;;  %3811 = vmatpush1.bf16.msra.mxu0 %v4914_v48  ;;  %v5003_v46 = vcombine.high %v504_v40, %v508_v41  ;;  %v496_v47 = vld [vmem:[#allocation8 + $0x410] sm:$0xff]  ;;  %v5002_v33 = vcombine.low %v504_v40, %v508_v41  ;;  %v4866_v57 = vcombine.low %v368_v32, %v372_v30 }
 0x1d5   :  { %3852 = vmatpush1.bf16.msra.mxu1 %v5042_v51  ;;  %v3519_v4 = vpop.f32.mrf.mxu0  ;;  %3812 = vmatprep.subr.bf16.mxu0 %v4907_v52  ;;  %v500_v48 = vld [vmem:[#allocation8 + $0x430] sm:$0xff]  ;;  %v4867_v51 = vcombine.high %v368_v32, %v372_v30 }
 0x1d6   :  { %v3560_v5 = vpop.f32.mrf.mxu1  ;;  %3853 = vmatprep.subr.bf16.mxu1 %v5035_v7  ;;  %v4995_v52 = vcombine.high %v496_v47, %v500_v48  ;;  %v488_v54 = vld [vmem:[#allocation8 + $0x3d0] sm:$0xff]  ;;  %v4994_v58 = vcombine.low %v496_v47, %v500_v48 }
 0x1d7   :  { %v492_v7 = vld [vmem:[#allocation8 + $0x3f0] sm:$0xff] }
 0x1d8   :  { %3813 = vmatpush1.bf16.msra.mxu0 %v4906_v3  ;;  %v4987_v60 = vcombine.high %v488_v54, %v492_v7  ;;  %v480_v3 = vld [vmem:[#allocation8 + $0x390] sm:$0xff] }
 0x1d9   :  { %3854 = vmatpush1.bf16.msra.mxu1 %v5034_v8  ;;  %3814 = vmatprep.subr.bf16.mxu0 %v4899_v9  ;;  %v484_v4 = vld [vmem:[#allocation8 + $0x3b0] sm:$0xff]  ;;  %v4986_v9 = vcombine.low %v488_v54, %v492_v7 }
 0x1da   :  { %3855 = vmatprep.subr.bf16.mxu1 %v5027_v10  ;;  %v608_v5 = vld [vmem:[#allocation8 + $0x790] sm:$0xff]  ;;  %v5114_v10 = vcombine.low %v616_v55, %v620_v56  ;;  %v4979_v11 = vcombine.high %v480_v3, %v484_v4 }
 0x1db   :  { %v612_v8 = vld [vmem:[#allocation8 + $0x7b0] sm:$0xff] }
 0x1dc   :  { %3815 = vmatpush1.bf16.msra.mxu0 %v4898_v17  ;;  %v5107_v12 = vcombine.high %v608_v5, %v612_v8  ;;  %v476_v15 = vld [vmem:[#allocation8 + $0x370] sm:$0xff] }
 0x1dd   :  { %3856 = vmatpush1.bf16.msra.mxu1 %v5026_v18  ;;  %3816 = vmatprep.subr.bf16.mxu0 %v4891_v19  ;;  %v600_v17 = vld [vmem:[#allocation8 + $0x750] sm:$0xff]  ;;  %v4978_v19 = vcombine.low %v480_v3, %v484_v4  ;;  %v4971_v21 = vcombine.high %v472_v14, %v476_v15 }
 0x1de   :  { %3857 = vmatprep.subr.bf16.mxu1 %v5019_v20  ;;  %v604_v18 = vld [vmem:[#allocation8 + $0x770] sm:$0xff]  ;;  %v5106_v20 = vcombine.low %v608_v5, %v612_v8 }
 0x1df   :  { %v5099_v23 = vcombine.high %v600_v17, %v604_v18  ;;  %v464_v24 = vld [vmem:[#allocation8 + $0x310] sm:$0xff] }
 0x1e0   :  { %3817 = vmatpush1.bf16.msra.mxu0 %v4890_v28  ;;  %v468_v27 = vld [vmem:[#allocation8 + $0x330] sm:$0xff] }
 0x1e1   :  { %3858 = vmatpush1.bf16.msra.mxu1 %v5018_v35  ;;  %3818 = vmatprep.subr.bf16.mxu0 %v4883_v36  ;;  %v592_v28 = vld [vmem:[#allocation8 + $0x710] sm:$0xff]  ;;  %v4970_v36 = vcombine.low %v472_v14, %v476_v15  ;;  %v4963_v25 = vcombine.high %v464_v24, %v468_v27 }
 0x1e2   :  { %3859 = vmatprep.subr.bf16.mxu1 %v5011_v37  ;;  %v596_v35 = vld [vmem:[#allocation8 + $0x730] sm:$0xff]  ;;  %v5098_v37 = vcombine.low %v600_v17, %v604_v18 }
 0x1e3   :  { %v5091_v39 = vcombine.high %v592_v28, %v596_v35  ;;  %v456_v40 = vld [vmem:[#allocation8 + $0x2d0] sm:$0xff] }
 0x1e4   :  { %3819 = vmatpush1.bf16.msra.mxu0 %v4882_v42  ;;  %v460_v41 = vld [vmem:[#allocation8 + $0x2f0] sm:$0xff] }
 0x1e5   :  { %3860 = vmatpush1.bf16.msra.mxu1 %v5010_v43  ;;  %3820 = vmatprep.subr.bf16.mxu0 %v4875_v44  ;;  %v584_v42 = vld [vmem:[#allocation8 + $0x6d0] sm:$0xff]  ;;  %v4962_v44 = vcombine.low %v464_v24, %v468_v27  ;;  %v4955_v32 = vcombine.high %v456_v40, %v460_v41 }
 0x1e6   :  { %3861 = vmatprep.subr.bf16.mxu1 %v5003_v46  ;;  %v588_v43 = vld [vmem:[#allocation8 + $0x6f0] sm:$0xff]  ;;  %v5090_v46 = vcombine.low %v592_v28, %v596_v35 }
 0x1e7   :  { %v5083_v30 = vcombine.high %v584_v42, %v588_v43  ;;  %v448_v47 = vld [vmem:[#allocation8 + $0x290] sm:$0xff] }
 0x1e8   :  { %3821 = vmatpush1.bf16.msra.mxu0 %v4874_v50  ;;  %v452_v48 = vld [vmem:[#allocation8 + $0x2b0] sm:$0xff] }
 0x1e9   :  { %3862 = vmatpush1.bf16.msra.mxu1 %v5002_v33  ;;  %3822 = vmatprep.subr.bf16.mxu0 %v4867_v51  ;;  %v576_v50 = vld [vmem:[#allocation8 + $0x690] sm:$0xff]  ;;  %v4954_v51 = vcombine.low %v456_v40, %v460_v41  ;;  %v4947_v54 = vcombine.high %v448_v47, %v452_v48 }
 0x1ea   :  { %3863 = vmatprep.subr.bf16.mxu1 %v4995_v52  ;;  %v580_v33 = vld [vmem:[#allocation8 + $0x6b0] sm:$0xff]  ;;  %v5082_v52 = vcombine.low %v584_v42, %v588_v43 }
 0x1eb   :  { %v5075_v7 = vcombine.high %v576_v50, %v580_v33  ;;  %v440_v55 = vld [vmem:[#allocation8 + $0x250] sm:$0xff] }
 0x1ec   :  { %3823 = vmatpush1.bf16.msra.mxu0 %v4866_v57  ;;  %v444_v56 = vld [vmem:[#allocation8 + $0x270] sm:$0xff] }
 0x1ed   :  { %3864 = vmatpush1.bf16.msra.mxu1 %v4994_v58  ;;  %3824 = vmatprep.subr.bf16.mxu0 %v4987_v60  ;;  %v568_v57 = vld [vmem:[#allocation8 + $0x650] sm:$0xff]  ;;  %v4946_v60 = vcombine.low %v448_v47, %v452_v48  ;;  %v4939_v3 = vcombine.high %v440_v55, %v444_v56 }
 0x1ee   :  { %3865 = vmatprep.subr.bf16.mxu1 %v5115_v61  ;;  %v572_v58 = vld [vmem:[#allocation8 + $0x670] sm:$0xff]  ;;  %v5074_v61 = vcombine.low %v576_v50, %v580_v33 }
 0x1ef   :  { %v5067_v4 = vcombine.high %v568_v57, %v572_v58  ;;  %v432_v5 = vld [vmem:[#allocation8 + $0x210] sm:$0xff] }
 0x1f0   :  { %3825 = vmatpush2.bf16.msra.mxu0 %v4986_v9  ;;  %v436_v8 = vld [vmem:[#allocation8 + $0x230] sm:$0xff] }
 0x1f1   :  { %3866 = vmatpush2.bf16.msra.mxu1 %v5114_v10  ;;  %3826 = vmatprep.subr.bf16.mxu0 %v4979_v11  ;;  %v560_v9 = vld [vmem:[#allocation8 + $0x610] sm:$0xff]  ;;  %v4938_v11 = vcombine.low %v440_v55, %v444_v56  ;;  %v4931_v14 = vcombine.high %v432_v5, %v436_v8 }
 0x1f2   :  { %3867 = vmatprep.subr.bf16.mxu1 %v5107_v12  ;;  %v564_v10 = vld [vmem:[#allocation8 + $0x630] sm:$0xff]  ;;  %v5066_v12 = vcombine.low %v568_v57, %v572_v58 }
 0x1f3   :  { %v5059_v15 = vcombine.high %v560_v9, %v564_v10  ;;  %v680_v17 = vld [vmem:[#allocation8 + $0x9d0] sm:$0xff] }
 0x1f4   :  { %3827 = vmatpush2.bf16.msra.mxu0 %v4978_v19  ;;  %v684_v18 = vld [vmem:[#allocation8 + $0x9f0] sm:$0xff] }
 0x1f5   :  { %3868 = vmatpush2.bf16.msra.mxu1 %v5106_v20  ;;  %3828 = vmatprep.subr.bf16.mxu0 %v4971_v21  ;;  %v808_v19 = vld [vmem:[#allocation8 + $0xdd0] sm:$0xff]  ;;  %v4930_v21 = vcombine.low %v432_v5, %v436_v8  ;;  %v5179_v24 = vcombine.high %v680_v17, %v684_v18 }
 0x1f6   :  { %3869 = vmatprep.subr.bf16.mxu1 %v5099_v23  ;;  %v812_v20 = vld [vmem:[#allocation8 + $0xdf0] sm:$0xff]  ;;  %v5058_v23 = vcombine.low %v560_v9, %v564_v10 }
 0x1f7   :  { %v5307_v27 = vcombine.high %v808_v19, %v812_v20  ;;  %v672_v28 = vld [vmem:[#allocation8 + $0x990] sm:$0xff] }
 0x1f8   :  { %3829 = vmatpush2.bf16.msra.mxu0 %v4970_v36  ;;  %v676_v35 = vld [vmem:[#allocation8 + $0x9b0] sm:$0xff]  ;;  %v5178_v36 = vcombine.low %v680_v17, %v684_v18 }
 0x1f9   :  { %3870 = vmatpush2.bf16.msra.mxu1 %v5098_v37  ;;  %3830 = vmatprep.subr.bf16.mxu0 %v4963_v25  ;;  %v800_v37 = vld [vmem:[#allocation8 + $0xd90] sm:$0xff]  ;;  %v5171_v40 = vcombine.high %v672_v28, %v676_v35  ;;  %v5170_v48 = vcombine.low %v672_v28, %v676_v35 }
 0x1fa   :  { %3871 = vmatprep.subr.bf16.mxu1 %v5091_v39  ;;  %v804_v25 = vld [vmem:[#allocation8 + $0xdb0] sm:$0xff]  ;;  %v5306_v39 = vcombine.low %v808_v19, %v812_v20 }
 0x1fb   :  { %v664_v41 = vld [vmem:[#allocation8 + $0x950] sm:$0xff] }
 0x1fc   :  { %3831 = vmatpush2.bf16.msra.mxu0 %v4962_v44  ;;  %v668_v42 = vld [vmem:[#allocation8 + $0x970] sm:$0xff] }
 0x1fd   :  { %3872 = vmatpush2.bf16.msra.mxu1 %v5090_v46  ;;  %3832 = vmatprep.subr.bf16.mxu0 %v4955_v32  ;;  %v5299_v46 = vcombine.high %v800_v37, %v804_v25  ;;  %v792_v32 = vld [vmem:[#allocation8 + $0xd50] sm:$0xff] }
 0x1fe   :  { %3873 = vmatprep.subr.bf16.mxu1 %v5083_v30  ;;  %v796_v30 = vld [vmem:[#allocation8 + $0xd70] sm:$0xff] }
 0x1ff   :  { %v5291_v55 = vcombine.high %v792_v32, %v796_v30  ;;  %v660_v56 = vld [vmem:[#allocation8 + $0x930] sm:$0xff]  ;;  %v5290_v9 = vcombine.low %v792_v32, %v796_v30 }
 0x200   :  { %3833 = vmatpush2.bf16.msra.mxu0 %v4954_v51  ;;  %v5298_v51 = vcombine.low %v800_v37, %v804_v25  ;;  %v632_v25 = vld [vmem:[#allocation8 + $0x850] sm:$0xff] }
 0x201   :  { %3874 = vmatpush2.bf16.msra.mxu1 %v5082_v52  ;;  %3834 = vmatprep.subr.bf16.mxu0 %v4947_v54  ;;  %v5163_v52 = vcombine.high %v664_v41, %v668_v42  ;;  %v624_v32 = vld [vmem:[#allocation8 + $0x810] sm:$0xff] }
 0x202   :  { %3875 = vmatprep.subr.bf16.mxu1 %v5075_v7  ;;  %v628_v30 = vld [vmem:[#allocation8 + $0x830] sm:$0xff] }
 0x204   :  { %3835 = vmatpush2.bf16.msra.mxu0 %v4946_v60  ;;  %v784_v60 = vld [vmem:[#allocation8 + $0xd10] sm:$0xff] }
 0x205   :  { %3876 = vmatpush2.bf16.msra.mxu1 %v5074_v61  ;;  %3836 = vmatprep.subr.bf16.mxu0 %v4939_v3  ;;  %v788_v61 = vld [vmem:[#allocation8 + $0xd30] sm:$0xff] }
 0x206   :  { %3877 = vmatprep.subr.bf16.mxu1 %v5067_v4  ;;  %v5162_v4 = vcombine.low %v664_v41, %v668_v42  ;;  %v5282_v18 = vcombine.low %v784_v60, %v788_v61  ;;  %v764_v41 = vld [vmem:[#allocation8 + $0xc70] sm:$0xff] }
 0x208   :  { %3837 = vmatpush2.bf16.msra.mxu0 %v4938_v11  ;;  %v648_v11 = vld [vmem:[#allocation8 + $0x8d0] sm:$0xff] }
 0x209   :  { %3878 = vmatpush2.bf16.msra.mxu1 %v5066_v12  ;;  %3838 = vmatprep.subr.bf16.mxu0 %v4931_v14  ;;  %v652_v12 = vld [vmem:[#allocation8 + $0x8f0] sm:$0xff] }
 0x20a   :  { %3879 = vmatprep.subr.bf16.mxu1 %v5059_v15  ;;  %v776_v14 = vld [vmem:[#allocation8 + $0xcd0] sm:$0xff]  ;;  %v5147_v19 = vcombine.high %v648_v11, %v652_v12  ;;  %v5146_v28 = vcombine.low %v648_v11, %v652_v12 }
 0x20b   :  { %v780_v15 = vld [vmem:[#allocation8 + $0xcf0] sm:$0xff] }
 0x20c   :  { %3839 = vmatpush2.bf16.msra.mxu0 %v4930_v21  ;;  %v5275_v20 = vcombine.high %v776_v14, %v780_v15  ;;  %v640_v21 = vld [vmem:[#allocation8 + $0x890] sm:$0xff]  ;;  %v5274_v35 = vcombine.low %v776_v14, %v780_v15 }
 0x20d   :  { %3880 = vmatpush2.bf16.msra.mxu1 %v5058_v23  ;;  %3890 = vmatprep.subr.bf16.mxu0 %v5179_v24  ;;  %v644_v23 = vld [vmem:[#allocation8 + $0x8b0] sm:$0xff] }
 0x20e   :  { %3931 = vmatprep.subr.bf16.mxu1 %v5307_v27  ;;  %v768_v24 = vld [vmem:[#allocation8 + $0xc90] sm:$0xff]  ;;  %v5138_v42 = vcombine.low %v640_v21, %v644_v23 }
 0x20f   :  { %v3596_v43 = vpop.f32.mrf.mxu0  ;;  %3841 = vmatmul.mubr.bf16.vlgmr.msra.gmra.mxu0 %v5842_v2  ;;  %v772_v27 = vld [vmem:[#allocation8 + $0xcb0] sm:$0xff] }
 0x210   :  { %v3637_v44 = vpop.f32.mrf.mxu1  ;;  %v3597_v47 = vadd.f32 %v3596_v43, %v5891_v53  ;;  %3882 = vmatmul.mubr.bf16.vlgmr.msra.gmra.mxu1 %v5830_v59  ;;  %3891 = vmatpush1.bf16.msra.mxu0 %v5178_v36  ;;  %v656_v53 = vld [vmem:[#allocation8 + $0x910] sm:$0xff]  ;;  %v5139_v36 = vcombine.high %v640_v21, %v644_v23  ;;  %v5267_v37 = vcombine.high %v768_v24, %v772_v27 }
 0x211   :  { %3922 = vmatprep.mubr.bf16.mxu0 %v5852_v26  ;;  %3932 = vmatpush1.bf16.msra.mxu1 %v5306_v39  ;;  %v3598_v50 = vpop.f32.mrf.mxu0  ;;  %v5155_v10 = vcombine.high %v656_v53, %v660_v56  ;;  %v5154_v17 = vcombine.low %v656_v53, %v660_v56  ;;  %v636_v39 = vld [vmem:[#allocation8 + $0x870] sm:$0xff]  ;;  %v5266_v43 = vcombine.low %v768_v24, %v772_v27 }
 0x212   :  { %v3639_v33 = vpop.f32.mrf.mxu1  ;;  %v5900_v54 = vadd.f32 %v3637_v44, %v3597_v47  ;;  %3963 = vmatprep.mubr.bf16.mxu1 %v5854_v38  ;;  %v3599_v7 = vadd.f32 %v3598_v50, %v5894_v0  ;;  %3892 = vmatprep.subr.bf16.mxu0 %v5171_v40  ;;  %v5283_v0 = vcombine.high %v784_v60, %v788_v61  ;;  %v760_v40 = vld [vmem:[#allocation8 + $0xc50] sm:$0xff] }
 0x213   :  { %v3600_v57 = vpop.f32.mrf.mxu0  ;;  %3933 = vmatprep.subr.bf16.mxu1 %v5299_v46  ;;  %v5131_v44 = vcombine.high %v632_v25, %v636_v39  ;;  %v5259_v46 = vcombine.high %v760_v40, %v764_v41  ;;  %v752_v47 = vld [vmem:[#allocation8 + $0xc10] sm:$0xff]  ;;  %v5130_v50 = vcombine.low %v632_v25, %v636_v39 }
 0x214   :  { %v3641_v58 = vpop.f32.mrf.mxu1  ;;  %v5904_v3 = vadd.f32 %v3639_v33, %v3599_v7  ;;  %3893 = vmatpush1.bf16.msra.mxu0 %v5170_v48  ;;  %v756_v48 = vld [vmem:[#allocation8 + $0xc30] sm:$0xff]  ;;  %v5258_v33 = vcombine.low %v760_v40, %v764_v41  ;;  %v5122_v57 = vcombine.low %v624_v32, %v628_v30 }
 0x215   :  { %3934 = vmatpush1.bf16.msra.mxu1 %v5298_v51  ;;  %v3601_v5 = vpop.f32.mrf.mxu0  ;;  %3894 = vmatprep.subr.bf16.mxu0 %v5163_v52  ;;  %v5123_v51 = vcombine.high %v624_v32, %v628_v30  ;;  %v5251_v52 = vcombine.high %v752_v47, %v756_v48  ;;  %v744_v7 = vld [vmem:[#allocation8 + $0xbd0] sm:$0xff]  ;;  %v5250_v58 = vcombine.low %v752_v47, %v756_v48 }
 0x216   :  { %v3642_v8 = vpop.f32.mrf.mxu1  ;;  %3935 = vmatprep.subr.bf16.mxu1 %v5291_v55  ;;  %v748_v55 = vld [vmem:[#allocation8 + $0xbf0] sm:$0xff] }
 0x217   :  { %v872_v53 = vld [vmem:[#allocation8 + $0xfd0] sm:$0xff]  ;;  %v5243_v60 = vcombine.high %v744_v7, %v748_v55 }
 0x218   :  { %3895 = vmatpush1.bf16.msra.mxu0 %v5162_v4  ;;  %v876_v56 = vld [vmem:[#allocation8 + $0xff0] sm:$0xff] }
 0x219   :  { %3936 = vmatpush1.bf16.msra.mxu1 %v5290_v9  ;;  %3896 = vmatprep.subr.bf16.mxu0 %v5155_v10  ;;  %v5371_v61 = vcombine.high %v872_v53, %v876_v56  ;;  %v736_v4 = vld [vmem:[#allocation8 + $0xb90] sm:$0xff]  ;;  %v5242_v10 = vcombine.low %v744_v7, %v748_v55 }
 0x21a   :  { %3937 = vmatprep.subr.bf16.mxu1 %v5283_v0  ;;  %v740_v5 = vld [vmem:[#allocation8 + $0xbb0] sm:$0xff]  ;;  %v5370_v0 = vcombine.low %v872_v53, %v876_v56 }
 0x21b   :  { %v864_v8 = vld [vmem:[#allocation8 + $0xf90] sm:$0xff]  ;;  %v5235_v11 = vcombine.high %v736_v4, %v740_v5 }
 0x21c   :  { %3897 = vmatpush1.bf16.msra.mxu0 %v5154_v17  ;;  %v868_v9 = vld [vmem:[#allocation8 + $0xfb0] sm:$0xff] }
 0x21d   :  { %3938 = vmatpush1.bf16.msra.mxu1 %v5282_v18  ;;  %3898 = vmatprep.subr.bf16.mxu0 %v5147_v19  ;;  %v5363_v12 = vcombine.high %v864_v8, %v868_v9  ;;  %v728_v14 = vld [vmem:[#allocation8 + $0xb50] sm:$0xff]  ;;  %v5234_v19 = vcombine.low %v736_v4, %v740_v5 }
 0x21e   :  { %3939 = vmatprep.subr.bf16.mxu1 %v5275_v20  ;;  %v732_v15 = vld [vmem:[#allocation8 + $0xb70] sm:$0xff]  ;;  %v5362_v20 = vcombine.low %v864_v8, %v868_v9 }
 0x21f   :  { %v856_v17 = vld [vmem:[#allocation8 + $0xf50] sm:$0xff]  ;;  %v5227_v21 = vcombine.high %v728_v14, %v732_v15 }
 0x220   :  { %3899 = vmatpush1.bf16.msra.mxu0 %v5146_v28  ;;  %v860_v18 = vld [vmem:[#allocation8 + $0xf70] sm:$0xff] }
 0x221   :  { %3940 = vmatpush1.bf16.msra.mxu1 %v5274_v35  ;;  %3900 = vmatprep.subr.bf16.mxu0 %v5139_v36  ;;  %v5355_v23 = vcombine.high %v856_v17, %v860_v18  ;;  %v720_v24 = vld [vmem:[#allocation8 + $0xb10] sm:$0xff]  ;;  %v5226_v36 = vcombine.low %v728_v14, %v732_v15 }
 0x222   :  { %3941 = vmatprep.subr.bf16.mxu1 %v5267_v37  ;;  %v724_v27 = vld [vmem:[#allocation8 + $0xb30] sm:$0xff]  ;;  %v5354_v37 = vcombine.low %v856_v17, %v860_v18  ;;  %v425_v17 = vld [vmem:[#allocation8 + $0x1d8] sm:$0xff] }
 0x223   :  { %v848_v28 = vld [vmem:[#allocation8 + $0xf10] sm:$0xff]  ;;  %v5219_v25 = vcombine.high %v720_v24, %v724_v27  ;;  %v429_v18 = vld [vmem:[#allocation8 + $0x1f8] sm:$0xff] }
 0x224   :  { %3901 = vmatpush1.bf16.msra.mxu0 %v5138_v42  ;;  %v852_v35 = vld [vmem:[#allocation8 + $0xf30] sm:$0xff] }
 0x225   :  { %3942 = vmatpush1.bf16.msra.mxu1 %v5266_v43  ;;  %3902 = vmatprep.subr.bf16.mxu0 %v5131_v44  ;;  %v5347_v39 = vcombine.high %v848_v28, %v852_v35  ;;  %v712_v40 = vld [vmem:[#allocation8 + $0xad0] sm:$0xff]  ;;  %v5218_v44 = vcombine.low %v720_v24, %v724_v27  ;;  %v4925_v24 = vcombine.high %v425_v17, %v429_v18 }
 0x226   :  { %3943 = vmatprep.subr.bf16.mxu1 %v5259_v46  ;;  %v716_v41 = vld [vmem:[#allocation8 + $0xaf0] sm:$0xff]  ;;  %v5346_v46 = vcombine.low %v848_v28, %v852_v35  ;;  %v417_v28 = vld [vmem:[#allocation8 + $0x198] sm:$0xff] }
 0x227   :  { %v840_v42 = vld [vmem:[#allocation8 + $0xed0] sm:$0xff]  ;;  %v5211_v32 = vcombine.high %v712_v40, %v716_v41  ;;  %v421_v35 = vld [vmem:[#allocation8 + $0x1b8] sm:$0xff] }
 0x228   :  { %3903 = vmatpush1.bf16.msra.mxu0 %v5130_v50  ;;  %v844_v43 = vld [vmem:[#allocation8 + $0xef0] sm:$0xff] }
 0x229   :  { %3944 = vmatpush1.bf16.msra.mxu1 %v5258_v33  ;;  %3904 = vmatprep.subr.bf16.mxu0 %v5123_v51  ;;  %v5339_v30 = vcombine.high %v840_v42, %v844_v43  ;;  %v704_v47 = vld [vmem:[#allocation8 + $0xa90] sm:$0xff]  ;;  %v5210_v51 = vcombine.low %v712_v40, %v716_v41  ;;  %v895_v41 = vrot.slane %v5880_v22, %v111_v34 }
 0x22a   :  { %3945 = vmatprep.subr.bf16.mxu1 %v5251_v52  ;;  %v708_v48 = vld [vmem:[#allocation8 + $0xab0] sm:$0xff]  ;;  %v5338_v52 = vcombine.low %v840_v42, %v844_v43  ;;  %v4917_v42 = vcombine.high %v417_v28, %v421_v35  ;;  %v409_v43 = vld [vmem:[#allocation8 + $0x158] sm:$0xff] }
 0x22b   :  { %v832_v50 = vld [vmem:[#allocation8 + $0xe90] sm:$0xff]  ;;  %v5203_v7 = vcombine.high %v704_v47, %v708_v48 }
 0x22c   :  { %3905 = vmatpush1.bf16.msra.mxu0 %v5122_v57  ;;  %v836_v33 = vld [vmem:[#allocation8 + $0xeb0] sm:$0xff] }
 0x22d   :  { %3946 = vmatpush1.bf16.msra.mxu1 %v5250_v58  ;;  %3906 = vmatprep.subr.bf16.mxu0 %v5243_v60  ;;  %v5331_v55 = vcombine.high %v832_v50, %v836_v33  ;;  %v696_v53 = vld [vmem:[#allocation8 + $0xa50] sm:$0xff]  ;;  %v5202_v60 = vcombine.low %v704_v47, %v708_v48 }
 0x22e   :  { %3947 = vmatprep.subr.bf16.mxu1 %v5371_v61  ;;  %v700_v56 = vld [vmem:[#allocation8 + $0xa70] sm:$0xff]  ;;  %v5330_v61 = vcombine.low %v832_v50, %v836_v33  ;;  %v4916_v50 = vcombine.low %v417_v28, %v421_v35 }
 0x22f   :  { %v824_v57 = vld [vmem:[#allocation8 + $0xe50] sm:$0xff]  ;;  %v5195_v4 = vcombine.high %v696_v53, %v700_v56 }
 0x230   :  { %3907 = vmatpush2.bf16.msra.mxu0 %v5242_v10  ;;  %v828_v58 = vld [vmem:[#allocation8 + $0xe70] sm:$0xff] }
 0x231   :  { %3948 = vmatpush2.bf16.msra.mxu1 %v5370_v0  ;;  %3908 = vmatprep.subr.bf16.mxu0 %v5235_v11  ;;  %v5323_v5 = vcombine.high %v824_v57, %v828_v58  ;;  %v688_v8 = vld [vmem:[#allocation8 + $0xa10] sm:$0xff]  ;;  %v5194_v11 = vcombine.low %v696_v53, %v700_v56  ;;  %v401_v53 = vld [vmem:[#allocation8 + $0x118] sm:$0xff] }
 0x232   :  { %3949 = vmatprep.subr.bf16.mxu1 %v5363_v12  ;;  %v692_v9 = vld [vmem:[#allocation8 + $0xa30] sm:$0xff]  ;;  %v5322_v12 = vcombine.low %v824_v57, %v828_v58  ;;  %v405_v56 = vld [vmem:[#allocation8 + $0x138] sm:$0xff] }
 0x233   :  { %v816_v10 = vld [vmem:[#allocation8 + $0xe10] sm:$0xff]  ;;  %v5187_v14 = vcombine.high %v688_v8, %v692_v9  ;;  %v529_v58 = vld [vmem:[#allocation8 + $0x518] sm:$0xff] }
 0x234   :  { %3909 = vmatpush2.bf16.msra.mxu0 %v5234_v19  ;;  %v820_v0 = vld [vmem:[#allocation8 + $0xe30] sm:$0xff]  ;;  %v553_v19 = vld [vmem:[#allocation8 + $0x5d8] sm:$0xff] }
 0x235   :  { %3950 = vmatpush2.bf16.msra.mxu1 %v5362_v20  ;;  %3910 = vmatprep.subr.bf16.mxu0 %v5227_v21  ;;  %v5315_v15 = vcombine.high %v816_v10, %v820_v0  ;;  %v557_v20 = vld [vmem:[#allocation8 + $0x5f8] sm:$0xff]  ;;  %v5186_v21 = vcombine.low %v688_v8, %v692_v9 }
 0x236   :  { %3951 = vmatprep.subr.bf16.mxu1 %v5355_v23  ;;  %v5314_v23 = vcombine.low %v816_v10, %v820_v0  ;;  %v5053_v27 = vcombine.high %v553_v19, %v557_v20  ;;  %v5052_v40 = vcombine.low %v553_v19, %v557_v20  ;;  %v393_v0 = vld [vmem:[#allocation8 + $0xd8] sm:$0xff] }
 0x237   :  { %v385_v20 = vld [vmem:[#allocation8 + $0x98] sm:$0xff] }
 0x238   :  { %3911 = vmatpush2.bf16.msra.mxu0 %v5226_v36  ;;  %v891_v36 = vrot.slane %v5880_v22, %v107_v31  ;;  %v541_v31 = vld [vmem:[#allocation8 + $0x578] sm:$0xff] }
 0x239   :  { %3952 = vmatpush2.bf16.msra.mxu1 %v5354_v37  ;;  %3912 = vmatprep.subr.bf16.mxu0 %v5219_v25  ;;  %v4924_v37 = vcombine.low %v425_v17, %v429_v18  ;;  %v545_v25 = vld [vmem:[#allocation8 + $0x598] sm:$0xff] }
 0x23a   :  { %3953 = vmatprep.subr.bf16.mxu1 %v5347_v39  ;;  %v549_v39 = vld [vmem:[#allocation8 + $0x5b8] sm:$0xff] }
 0x23b   :  { %v5044_v34 = vcombine.low %v545_v25, %v549_v39 }
 0x23c   :  { %3913 = vmatpush2.bf16.msra.mxu0 %v5218_v44  ;;  %v413_v44 = vld [vmem:[#allocation8 + $0x178] sm:$0xff] }
 0x23d   :  { %3954 = vmatpush2.bf16.msra.mxu1 %v5346_v46  ;;  %3914 = vmatprep.subr.bf16.mxu0 %v5211_v32  ;;  %v5045_v32 = vcombine.high %v545_v25, %v549_v39  ;;  %v4909_v22 = vcombine.high %v409_v43, %v413_v44  ;;  %v381_v25 = vld [vmem:[#allocation8 + $0x78] sm:$0xff] }
 0x23e   :  { %3955 = vmatprep.subr.bf16.mxu1 %v5339_v30  ;;  %v537_v30 = vld [vmem:[#allocation8 + $0x558] sm:$0xff] }
 0x23f   :  { %v5036_v8 = vcombine.low %v537_v30, %v541_v31  ;;  %v505_v39 = vld [vmem:[#allocation8 + $0x458] sm:$0xff] }
 0x240   :  { %3915 = vmatpush2.bf16.msra.mxu0 %v5210_v51 }
 0x241   :  { %3956 = vmatpush2.bf16.msra.mxu1 %v5338_v52  ;;  %3916 = vmatprep.subr.bf16.mxu0 %v5203_v7 }
 0x242   :  { %3957 = vmatprep.subr.bf16.mxu1 %v5331_v55  ;;  %v5037_v55 = vcombine.high %v537_v30, %v541_v31  ;;  %v497_v30 = vld [vmem:[#allocation8 + $0x418] sm:$0xff] }
 0x243   :  { %v501_v31 = vld [vmem:[#allocation8 + $0x438] sm:$0xff] }
 0x244   :  { %3917 = vmatpush2.bf16.msra.mxu0 %v5202_v60  ;;  %v533_v60 = vld [vmem:[#allocation8 + $0x538] sm:$0xff] }
 0x245   :  { %3958 = vmatpush2.bf16.msra.mxu1 %v5330_v61  ;;  %3918 = vmatprep.subr.bf16.mxu0 %v5195_v4  ;;  %v4908_v4 = vcombine.low %v409_v43, %v413_v44  ;;  %v5029_v10 = vcombine.high %v529_v58, %v533_v60  ;;  %v5028_v17 = vcombine.low %v529_v58, %v533_v60  ;;  %v481_v58 = vld [vmem:[#allocation8 + $0x398] sm:$0xff] }
 0x246   :  { %3959 = vmatprep.subr.bf16.mxu1 %v5323_v5  ;;  %v485_v60 = vld [vmem:[#allocation8 + $0x3b8] sm:$0xff] }
 0x248   :  { %3919 = vmatpush2.bf16.msra.mxu0 %v5194_v11  ;;  %v397_v11 = vld [vmem:[#allocation8 + $0xf8] sm:$0xff] }
 0x249   :  { %3960 = vmatpush2.bf16.msra.mxu1 %v5322_v12  ;;  %3920 = vmatprep.subr.bf16.mxu0 %v5187_v14  ;;  %v521_v12 = vld [vmem:[#allocation8 + $0x4d8] sm:$0xff]  ;;  %v4893_v18 = vcombine.high %v393_v0, %v397_v11 }
 0x24a   :  { %3961 = vmatprep.subr.bf16.mxu1 %v5315_v15  ;;  %v525_v14 = vld [vmem:[#allocation8 + $0x4f8] sm:$0xff]  ;;  %v4900_v15 = vcombine.low %v401_v53, %v405_v56 }
 0x24b   :  { %v5021_v19 = vcombine.high %v521_v12, %v525_v14  ;;  %v5020_v28 = vcombine.low %v521_v12, %v525_v14  ;;  %v605_v12 = vld [vmem:[#allocation8 + $0x778] sm:$0xff]  ;;  %v4980_v14 = vcombine.low %v481_v58, %v485_v60 }
 0x24c   :  { %3921 = vmatpush2.bf16.msra.mxu0 %v5186_v21  ;;  %v389_v21 = vld [vmem:[#allocation8 + $0xb8] sm:$0xff] }
 0x24d   :  { %3962 = vmatpush2.bf16.msra.mxu1 %v5314_v23  ;;  %3972 = vmatprep.subr.bf16.mxu0 %v4925_v24  ;;  %v513_v23 = vld [vmem:[#allocation8 + $0x498] sm:$0xff]  ;;  %v4885_v35 = vcombine.high %v385_v20, %v389_v21 }
 0x24e   :  { %4013 = vmatprep.subr.bf16.mxu1 %v5053_v27  ;;  %v517_v24 = vld [vmem:[#allocation8 + $0x4b8] sm:$0xff]  ;;  %v4892_v27 = vcombine.low %v393_v0, %v397_v11 }
 0x24f   :  { %v3678_v46 = vpop.f32.mrf.mxu0  ;;  %3923 = vmatmul.mubr.bf16.vlgmr.msra.gmra.mxu0 %v5870_v1  ;;  %v477_v0 = vld [vmem:[#allocation8 + $0x378] sm:$0xff] }
 0x250   :  { %v3679_v47 = vadd.f32 %v3678_v46, %v891_v36  ;;  %v3719_v48 = vpop.f32.mrf.mxu1  ;;  %3964 = vmatmul.mubr.bf16.vlgmr.msra.gmra.mxu1 %v5868_v6  ;;  %3973 = vmatpush1.bf16.msra.mxu0 %v4924_v37  ;;  %v5013_v36 = vcombine.high %v513_v23, %v517_v24  ;;  %v377_v37 = vld [vmem:[#allocation8 + $0x58] sm:$0xff] }
 0x251   :  { %4004 = vmatprep.mubr.bf16.mxu0 %v5832_v62  ;;  %4014 = vmatpush1.bf16.msra.mxu1 %v5052_v40  ;;  %v3680_v33 = vpop.f32.mrf.mxu0  ;;  %v509_v40 = vld [vmem:[#allocation8 + $0x478] sm:$0xff]  ;;  %v4877_v43 = vcombine.high %v377_v37, %v381_v25 }
 0x252   :  { %v5915_v51 = vadd.f32 %v3719_v48, %v3679_v47  ;;  %4045 = vmatprep.mubr.bf16.mxu1 %v5834_v63  ;;  %v3681_v52 = vadd.f32 %v3680_v33, %v895_v41  ;;  %v3721_v7 = vpop.f32.mrf.mxu1  ;;  %3974 = vmatprep.subr.bf16.mxu0 %v4917_v42  ;;  %v4901_v63 = vcombine.high %v401_v53, %v405_v56  ;;  %v369_v46 = vld [vmem:[#allocation8 + $0x18] sm:$0xff] }
 0x253   :  { %v3682_v57 = vpop.f32.mrf.mxu0  ;;  %4015 = vmatprep.subr.bf16.mxu1 %v5045_v32  ;;  %v4884_v41 = vcombine.low %v385_v20, %v389_v21  ;;  %v5012_v42 = vcombine.low %v513_v23, %v517_v24  ;;  %v5005_v44 = vcombine.high %v505_v39, %v509_v40  ;;  %v373_v32 = vld [vmem:[#allocation8 + $0x38] sm:$0xff]  ;;  %v4876_v47 = vcombine.low %v377_v37, %v381_v25 }
 0x254   :  { %v5918_v61 = vadd.f32 %v3721_v7, %v3681_v52  ;;  %v3723_v62 = vpop.f32.mrf.mxu1  ;;  %3975 = vmatpush1.bf16.msra.mxu0 %v4916_v50  ;;  %v5004_v48 = vcombine.low %v505_v39, %v509_v40  ;;  %v4869_v50 = vcombine.high %v369_v46, %v373_v32  ;;  %v4997_v33 = vcombine.high %v497_v30, %v501_v31  ;;  %v617_v52 = vld [vmem:[#allocation8 + $0x7d8] sm:$0xff] }
 0x255   :  { %4016 = vmatpush1.bf16.msra.mxu1 %v5044_v34  ;;  %v3683_v5 = vpop.f32.mrf.mxu0  ;;  %3976 = vmatprep.subr.bf16.mxu0 %v4909_v22  ;;  %v489_v34 = vld [vmem:[#allocation8 + $0x3d8] sm:$0xff]  ;;  %v4996_v53 = vcombine.low %v497_v30, %v501_v31 }
 0x256   :  { %v3724_v9 = vpop.f32.mrf.mxu1  ;;  %4017 = vmatprep.subr.bf16.mxu1 %v5037_v55  ;;  %v493_v22 = vld [vmem:[#allocation8 + $0x3f8] sm:$0xff]  ;;  %v4868_v55 = vcombine.low %v369_v46, %v373_v32 }
 0x257   :  { %v621_v7 = vld [vmem:[#allocation8 + $0x7f8] sm:$0xff]  ;;  %v4989_v56 = vcombine.high %v489_v34, %v493_v22  ;;  %v4988_v5 = vcombine.low %v489_v34, %v493_v22 }
 0x258   :  { %3977 = vmatpush1.bf16.msra.mxu0 %v4908_v4  ;;  %v5117_v57 = vcombine.high %v617_v52, %v621_v7  ;;  %v609_v62 = vld [vmem:[#allocation8 + $0x798] sm:$0xff] }
 0x259   :  { %4018 = vmatpush1.bf16.msra.mxu1 %v5036_v8  ;;  %3978 = vmatprep.subr.bf16.mxu0 %v4901_v63  ;;  %v613_v4 = vld [vmem:[#allocation8 + $0x7b8] sm:$0xff]  ;;  %v5116_v8 = vcombine.low %v617_v52, %v621_v7  ;;  %v4981_v63 = vcombine.high %v481_v58, %v485_v60 }
 0x25a   :  { %4019 = vmatprep.subr.bf16.mxu1 %v5029_v10  ;;  %v5109_v9 = vcombine.high %v609_v62, %v613_v4  ;;  %v473_v10 = vld [vmem:[#allocation8 + $0x358] sm:$0xff] }
 0x25b   :  { %v601_v11 = vld [vmem:[#allocation8 + $0x758] sm:$0xff]  ;;  %v4972_v24 = vcombine.low %v473_v10, %v477_v0 }
 0x25c   :  { %3979 = vmatpush1.bf16.msra.mxu0 %v4900_v15  ;;  %v5108_v15 = vcombine.low %v609_v62, %v613_v4  ;;  %v469_v20 = vld [vmem:[#allocation8 + $0x338] sm:$0xff] }
 0x25d   :  { %4020 = vmatpush1.bf16.msra.mxu1 %v5028_v17  ;;  %3980 = vmatprep.subr.bf16.mxu0 %v4893_v18  ;;  %v4973_v17 = vcombine.high %v473_v10, %v477_v0  ;;  %v5101_v18 = vcombine.high %v601_v11, %v605_v12  ;;  %v593_v21 = vld [vmem:[#allocation8 + $0x718] sm:$0xff] }
 0x25e   :  { %4021 = vmatprep.subr.bf16.mxu1 %v5021_v19  ;;  %v465_v19 = vld [vmem:[#allocation8 + $0x318] sm:$0xff] }
 0x25f   :  { %v597_v23 = vld [vmem:[#allocation8 + $0x738] sm:$0xff]  ;;  %v4964_v40 = vcombine.low %v465_v19, %v469_v20 }
 0x260   :  { %3981 = vmatpush1.bf16.msra.mxu0 %v4892_v27  ;;  %v5100_v27 = vcombine.low %v601_v11, %v605_v12  ;;  %v461_v37 = vld [vmem:[#allocation8 + $0x2f8] sm:$0xff] }
 0x261   :  { %4022 = vmatpush1.bf16.msra.mxu1 %v5020_v28  ;;  %3982 = vmatprep.subr.bf16.mxu0 %v4885_v35  ;;  %v4965_v28 = vcombine.high %v465_v19, %v469_v20  ;;  %v5093_v35 = vcombine.high %v593_v21, %v597_v23  ;;  %v585_v25 = vld [vmem:[#allocation8 + $0x6d8] sm:$0xff] }
 0x262   :  { %4023 = vmatprep.subr.bf16.mxu1 %v5013_v36  ;;  %v457_v36 = vld [vmem:[#allocation8 + $0x2d8] sm:$0xff] }
 0x263   :  { %v589_v39 = vld [vmem:[#allocation8 + $0x6f8] sm:$0xff]  ;;  %v4956_v31 = vcombine.low %v457_v36, %v461_v37 }
 0x264   :  { %3983 = vmatpush1.bf16.msra.mxu0 %v4884_v41  ;;  %v5092_v41 = vcombine.low %v593_v21, %v597_v23  ;;  %v453_v46 = vld [vmem:[#allocation8 + $0x2b8] sm:$0xff] }
 0x265   :  { %4024 = vmatpush1.bf16.msra.mxu1 %v5012_v42  ;;  %3984 = vmatprep.subr.bf16.mxu0 %v4877_v43  ;;  %v4957_v42 = vcombine.high %v457_v36, %v461_v37  ;;  %v5085_v43 = vcombine.high %v585_v25, %v589_v39  ;;  %v577_v32 = vld [vmem:[#allocation8 + $0x698] sm:$0xff] }
 0x266   :  { %4025 = vmatprep.subr.bf16.mxu1 %v5005_v44  ;;  %v449_v44 = vld [vmem:[#allocation8 + $0x298] sm:$0xff] }
 0x267   :  { %v581_v30 = vld [vmem:[#allocation8 + $0x6b8] sm:$0xff]  ;;  %v4948_v7 = vcombine.low %v449_v44, %v453_v46 }
 0x268   :  { %3985 = vmatpush1.bf16.msra.mxu0 %v4876_v47  ;;  %v5084_v47 = vcombine.low %v585_v25, %v589_v39  ;;  %v445_v34 = vld [vmem:[#allocation8 + $0x278] sm:$0xff] }
 0x269   :  { %4026 = vmatpush1.bf16.msra.mxu1 %v5004_v48  ;;  %3986 = vmatprep.subr.bf16.mxu0 %v4869_v50  ;;  %v4949_v48 = vcombine.high %v449_v44, %v453_v46  ;;  %v5077_v50 = vcombine.high %v577_v32, %v581_v30  ;;  %v569_v22 = vld [vmem:[#allocation8 + $0x658] sm:$0xff] }
 0x26a   :  { %4027 = vmatprep.subr.bf16.mxu1 %v4997_v33  ;;  %v441_v33 = vld [vmem:[#allocation8 + $0x258] sm:$0xff] }
 0x26b   :  { %v573_v52 = vld [vmem:[#allocation8 + $0x678] sm:$0xff]  ;;  %v4940_v4 = vcombine.low %v441_v33, %v445_v34 }
 0x26c   :  { %3987 = vmatpush1.bf16.msra.mxu0 %v4868_v55  ;;  %v5076_v55 = vcombine.low %v577_v32, %v581_v30  ;;  %v437_v58 = vld [vmem:[#allocation8 + $0x238] sm:$0xff] }
 0x26d   :  { %4028 = vmatpush1.bf16.msra.mxu1 %v4996_v53  ;;  %3988 = vmatprep.subr.bf16.mxu0 %v4989_v56  ;;  %v4941_v53 = vcombine.high %v441_v33, %v445_v34  ;;  %v5069_v56 = vcombine.high %v569_v22, %v573_v52  ;;  %v561_v60 = vld [vmem:[#allocation8 + $0x618] sm:$0xff] }
 0x26e   :  { %4029 = vmatprep.subr.bf16.mxu1 %v5117_v57  ;;  %v433_v57 = vld [vmem:[#allocation8 + $0x218] sm:$0xff] }
 0x26f   :  { %v565_v62 = vld [vmem:[#allocation8 + $0x638] sm:$0xff]  ;;  %v4932_v12 = vcombine.low %v433_v57, %v437_v58 }
 0x270   :  { %3989 = vmatpush2.bf16.msra.mxu0 %v4988_v5  ;;  %v5068_v5 = vcombine.low %v569_v22, %v573_v52  ;;  %v685_v10 = vld [vmem:[#allocation8 + $0x9f8] sm:$0xff] }
 0x271   :  { %4030 = vmatpush2.bf16.msra.mxu1 %v5116_v8  ;;  %3990 = vmatprep.subr.bf16.mxu0 %v4981_v63  ;;  %v4933_v8 = vcombine.high %v433_v57, %v437_v58  ;;  %v5061_v63 = vcombine.high %v561_v60, %v565_v62  ;;  %v809_v0 = vld [vmem:[#allocation8 + $0xdd8] sm:$0xff] }
 0x272   :  { %4031 = vmatprep.subr.bf16.mxu1 %v5109_v9  ;;  %v681_v9 = vld [vmem:[#allocation8 + $0x9d8] sm:$0xff] }
 0x273   :  { %v813_v11 = vld [vmem:[#allocation8 + $0xdf8] sm:$0xff]  ;;  %v5180_v20 = vcombine.low %v681_v9, %v685_v10 }
 0x274   :  { %3991 = vmatpush2.bf16.msra.mxu0 %v4980_v14  ;;  %v5060_v14 = vcombine.low %v561_v60, %v565_v62  ;;  %v677_v19 = vld [vmem:[#allocation8 + $0x9b8] sm:$0xff] }
 0x275   :  { %4032 = vmatpush2.bf16.msra.mxu1 %v5108_v15  ;;  %3992 = vmatprep.subr.bf16.mxu0 %v4973_v17  ;;  %v5181_v15 = vcombine.high %v681_v9, %v685_v10  ;;  %v5309_v17 = vcombine.high %v809_v0, %v813_v11  ;;  %v801_v21 = vld [vmem:[#allocation8 + $0xd98] sm:$0xff] }
 0x276   :  { %4033 = vmatprep.subr.bf16.mxu1 %v5101_v18  ;;  %v673_v18 = vld [vmem:[#allocation8 + $0x998] sm:$0xff] }
 0x277   :  { %v805_v23 = vld [vmem:[#allocation8 + $0xdb8] sm:$0xff] }
 0x278   :  { %3993 = vmatpush2.bf16.msra.mxu0 %v4972_v24  ;;  %v5308_v24 = vcombine.low %v809_v0, %v813_v11  ;;  %v5301_v37 = vcombine.high %v801_v21, %v805_v23  ;;  %v793_v25 = vld [vmem:[#allocation8 + $0xd58] sm:$0xff]  ;;  %v5300_v44 = vcombine.low %v801_v21, %v805_v23 }
 0x279   :  { %4034 = vmatpush2.bf16.msra.mxu1 %v5100_v27  ;;  %3994 = vmatprep.subr.bf16.mxu0 %v4965_v28  ;;  %v5173_v27 = vcombine.high %v673_v18, %v677_v19  ;;  %v665_v28 = vld [vmem:[#allocation8 + $0x958] sm:$0xff] }
 0x27a   :  { %4035 = vmatprep.subr.bf16.mxu1 %v5093_v35  ;;  %v669_v35 = vld [vmem:[#allocation8 + $0x978] sm:$0xff] }
 0x27b   :  { %v797_v39 = vld [vmem:[#allocation8 + $0xd78] sm:$0xff]  ;;  %v5165_v46 = vcombine.high %v665_v28, %v669_v35 }
 0x27c   :  { %3995 = vmatpush2.bf16.msra.mxu0 %v4964_v40  ;;  %v657_v30 = vld [vmem:[#allocation8 + $0x918] sm:$0xff]  ;;  %v5292_v34 = vcombine.low %v793_v25, %v797_v39 }
 0x27d   :  { %4036 = vmatpush2.bf16.msra.mxu1 %v5092_v41  ;;  %3996 = vmatprep.subr.bf16.mxu0 %v4957_v42  ;;  %v5172_v42 = vcombine.low %v673_v18, %v677_v19  ;;  %v625_v23 = vld [vmem:[#allocation8 + $0x818] sm:$0xff] }
 0x27e   :  { %4037 = vmatprep.subr.bf16.mxu1 %v5085_v43 }
 0x280   :  { %3997 = vmatpush2.bf16.msra.mxu0 %v4956_v31  ;;  %v661_v31 = vld [vmem:[#allocation8 + $0x938] sm:$0xff] }
 0x281   :  { %4038 = vmatpush2.bf16.msra.mxu1 %v5084_v47  ;;  %3998 = vmatprep.subr.bf16.mxu0 %v4949_v48  ;;  %v785_v47 = vld [vmem:[#allocation8 + $0xd18] sm:$0xff]  ;;  %v5157_v22 = vcombine.high %v657_v30, %v661_v31  ;;  %v5156_v57 = vcombine.low %v657_v30, %v661_v31 }
 0x282   :  { %4039 = vmatprep.subr.bf16.mxu1 %v5077_v50  ;;  %v789_v48 = vld [vmem:[#allocation8 + $0xd38] sm:$0xff]  ;;  %v5164_v50 = vcombine.low %v665_v28, %v669_v35 }
 0x283   :  { %v5284_v58 = vcombine.low %v785_v47, %v789_v48  ;;  %v757_v28 = vld [vmem:[#allocation8 + $0xc38] sm:$0xff] }
 0x284   :  { %3999 = vmatpush2.bf16.msra.mxu0 %v4948_v7  ;;  %v649_v7 = vld [vmem:[#allocation8 + $0x8d8] sm:$0xff] }
 0x285   :  { %4040 = vmatpush2.bf16.msra.mxu1 %v5076_v55  ;;  %4000 = vmatprep.subr.bf16.mxu0 %v4941_v53  ;;  %v653_v55 = vld [vmem:[#allocation8 + $0x8f8] sm:$0xff] }
 0x286   :  { %4041 = vmatprep.subr.bf16.mxu1 %v5069_v56  ;;  %v777_v53 = vld [vmem:[#allocation8 + $0xcd8] sm:$0xff]  ;;  %v5149_v60 = vcombine.high %v649_v7, %v653_v55  ;;  %v5148_v9 = vcombine.low %v649_v7, %v653_v55 }
 0x287   :  { %v781_v56 = vld [vmem:[#allocation8 + $0xcf8] sm:$0xff] }
 0x288   :  { %4001 = vmatpush2.bf16.msra.mxu0 %v4940_v4  ;;  %v5277_v62 = vcombine.high %v777_v53, %v781_v56  ;;  %v641_v4 = vld [vmem:[#allocation8 + $0x898] sm:$0xff]  ;;  %v5276_v10 = vcombine.low %v777_v53, %v781_v56 }
 0x289   :  { %4042 = vmatpush2.bf16.msra.mxu1 %v5068_v5  ;;  %4002 = vmatprep.subr.bf16.mxu0 %v4933_v8  ;;  %v645_v5 = vld [vmem:[#allocation8 + $0x8b8] sm:$0xff] }
 0x28a   :  { %4043 = vmatprep.subr.bf16.mxu1 %v5061_v63  ;;  %v769_v8 = vld [vmem:[#allocation8 + $0xc98] sm:$0xff]  ;;  %v5141_v0 = vcombine.high %v641_v4, %v645_v5  ;;  %v5140_v18 = vcombine.low %v641_v4, %v645_v5 }
 0x28b   :  { %v773_v63 = vld [vmem:[#allocation8 + $0xcb8] sm:$0xff] }
 0x28c   :  { %4003 = vmatpush2.bf16.msra.mxu0 %v4932_v12  ;;  %v5269_v11 = vcombine.high %v769_v8, %v773_v63  ;;  %v633_v12 = vld [vmem:[#allocation8 + $0x858] sm:$0xff]  ;;  %v5268_v19 = vcombine.low %v769_v8, %v773_v63 }
 0x28d   :  { %4044 = vmatpush2.bf16.msra.mxu1 %v5060_v14  ;;  %4054 = vmatprep.subr.bf16.mxu0 %v5181_v15  ;;  %v637_v14 = vld [vmem:[#allocation8 + $0x878] sm:$0xff] }
 0x28e   :  { %4095 = vmatprep.subr.bf16.mxu1 %v5309_v17  ;;  %v761_v15 = vld [vmem:[#allocation8 + $0xc58] sm:$0xff]  ;;  %v5132_v35 = vcombine.low %v633_v12, %v637_v14 }
 0x28f   :  { %v3760_v36 = vpop.f32.mrf.mxu0  ;;  %4005 = vmatmul.mubr.bf16.vlgmr.msra.gmra.mxu0 %v5842_v2  ;;  %v765_v17 = vld [vmem:[#allocation8 + $0xc78] sm:$0xff] }
 0x290   :  { %v3761_v40 = vadd.f32 %v3760_v36, %v5915_v51  ;;  %v3801_v41 = vpop.f32.mrf.mxu1  ;;  %4046 = vmatmul.mubr.bf16.vlgmr.msra.gmra.mxu1 %v5830_v59  ;;  %4055 = vmatpush1.bf16.msra.mxu0 %v5180_v20  ;;  %v5293_v51 = vcombine.high %v793_v25, %v797_v39  ;;  %v5133_v20 = vcombine.high %v633_v12, %v637_v14  ;;  %v745_v39 = vld [vmem:[#allocation8 + $0xbd8] sm:$0xff] }
 0x291   :  { %4086 = vmatprep.mubr.bf16.mxu0 %v5852_v26  ;;  %4096 = vmatpush1.bf16.msra.mxu1 %v5308_v24  ;;  %v5924_v43 = vpop.f32.mrf.mxu0  ;;  %v5261_v21 = vcombine.high %v761_v15, %v765_v17  ;;  %v629_v24 = vld [vmem:[#allocation8 + $0x838] sm:$0xff]  ;;  %v5260_v36 = vcombine.low %v761_v15, %v765_v17 }
 0x292   :  { %v5926_v32 = vadd.f32 %v3801_v41, %v3761_v40  ;;  %4127 = vmatprep.mubr.bf16.mxu1 %v5854_v38  ;;  %v5929_v2 = vpop.f32.mrf.mxu1  ;;  %4056 = vmatprep.subr.bf16.mxu0 %v5173_v27  ;;  %v5285_v38 = vcombine.high %v785_v47, %v789_v48  ;;  %v753_v27 = vld [vmem:[#allocation8 + $0xc18] sm:$0xff] }
 0x293   :  { %v3764_v59 = vpop.f32.mrf.mxu0  ;;  %4097 = vmatprep.subr.bf16.mxu1 %v5301_v37  ;;  %v5125_v37 = vcombine.high %v625_v23, %v629_v24  ;;  %v5253_v25 = vcombine.high %v753_v27, %v757_v28  ;;  %v749_v40 = vld [vmem:[#allocation8 + $0xbf8] sm:$0xff] }
 0x294   :  { %v3805_v26 = vpop.f32.mrf.mxu1  ;;  %4057 = vmatpush1.bf16.msra.mxu0 %v5172_v42  ;;  %v873_v41 = vld [vmem:[#allocation8 + $0xfd8] sm:$0xff] }
 0x295   :  { %4098 = vmatpush1.bf16.msra.mxu1 %v5300_v44  ;;  %v3765_v33 = vpop.f32.mrf.mxu0  ;;  %4058 = vmatprep.subr.bf16.mxu0 %v5165_v46  ;;  %v877_v42 = vld [vmem:[#allocation8 + $0xff8] sm:$0xff]  ;;  %v5124_v44 = vcombine.low %v625_v23, %v629_v24  ;;  %v5252_v46 = vcombine.low %v753_v27, %v757_v28  ;;  %v5244_v26 = vcombine.low %v745_v39, %v749_v40 }
 0x296   :  { %v3806_v52 = vpop.f32.mrf.mxu1  ;;  %4099 = vmatprep.subr.bf16.mxu1 %v5293_v51  ;;  %v5245_v51 = vcombine.high %v745_v39, %v749_v40  ;;  %v5373_v30 = vcombine.high %v873_v41, %v877_v42  ;;  %v737_v31 = vld [vmem:[#allocation8 + $0xb98] sm:$0xff] }
 0x297   :  { %v741_v59 = vld [vmem:[#allocation8 + $0xbb8] sm:$0xff] }
 0x298   :  { %4059 = vmatpush1.bf16.msra.mxu0 %v5164_v50  ;;  %v865_v47 = vld [vmem:[#allocation8 + $0xf98] sm:$0xff]  ;;  %v5372_v50 = vcombine.low %v873_v41, %v877_v42  ;;  %v5237_v33 = vcombine.high %v737_v31, %v741_v59  ;;  %v5236_v55 = vcombine.low %v737_v31, %v741_v59  ;;  %v3763_v59 = vadd.f32 %v5924_v43, %v5918_v61  ;;  %v5544_v61 = vld [vmem:[%s6159_s5 + $0xf8] sm:$0xff]  }
 0x299   :  { %4100 = vmatpush1.bf16.msra.mxu1 %v5292_v34  ;;  %4060 = vmatprep.subr.bf16.mxu0 %v5157_v22  ;;  %v869_v48 = vld [vmem:[#allocation8 + $0xfb8] sm:$0xff]  ;;  %v4137_v43 = vmax.f32 %v5904_v3, 0.0 }
 0x29a   :  { %4101 = vmatprep.subr.bf16.mxu1 %v5285_v38  ;;  %v5365_v34 = vcombine.high %v865_v47, %v869_v48  ;;  %v729_v22 = vld [vmem:[#allocation8 + $0xb58] sm:$0xff]  ;;  %v5364_v53 = vcombine.low %v865_v47, %v869_v48 }
 0x29b   :  { %v733_v52 = vld [vmem:[#allocation8 + $0xb78] sm:$0xff] }
 0x29c   :  { %4061 = vmatpush1.bf16.msra.mxu0 %v5156_v57  ;;  %v857_v38 = vld [vmem:[#allocation8 + $0xf58] sm:$0xff]  ;;  %v5229_v56 = vcombine.high %v729_v22, %v733_v52  ;;  %v5228_v5 = vcombine.low %v729_v22, %v733_v52  ;;  %v5543_v52 = vld [vmem:[%s6159_s5 + $0x78] sm:$0xff]  }
 0x29d   :  { %4102 = vmatpush1.bf16.msra.mxu1 %v5284_v58  ;;  %4062 = vmatprep.subr.bf16.mxu0 %v5149_v60  ;;  %v861_v7 = vld [vmem:[#allocation8 + $0xf78] sm:$0xff] }
 0x29e   :  { %4103 = vmatprep.subr.bf16.mxu1 %v5277_v62  ;;  %v5357_v57 = vcombine.high %v857_v38, %v861_v7  ;;  %v721_v58 = vld [vmem:[#allocation8 + $0xb18] sm:$0xff]  ;;  %v5356_v8 = vcombine.low %v857_v38, %v861_v7  ;;  %v5546_v7 = vld [vmem:[%s6159_s5 + $0xb8] sm:$0xff]  }
 0x29f   :  { %v725_v60 = vld [vmem:[#allocation8 + $0xb38] sm:$0xff] }
 0x2a0   :  { %4063 = vmatpush1.bf16.msra.mxu0 %v5148_v9  ;;  %v849_v62 = vld [vmem:[#allocation8 + $0xf18] sm:$0xff]  ;;  %v5221_v63 = vcombine.high %v721_v58, %v725_v60  ;;  %v5220_v14 = vcombine.low %v721_v58, %v725_v60 }
 0x2a1   :  { %4104 = vmatpush1.bf16.msra.mxu1 %v5276_v10  ;;  %4064 = vmatprep.subr.bf16.mxu0 %v5141_v0  ;;  %v853_v4 = vld [vmem:[#allocation8 + $0xf38] sm:$0xff] }
 0x2a2   :  { %4105 = vmatprep.subr.bf16.mxu1 %v5269_v11  ;;  %v5349_v9 = vcombine.high %v849_v62, %v853_v4  ;;  %v713_v10 = vld [vmem:[#allocation8 + $0xad8] sm:$0xff]  ;;  %v5348_v15 = vcombine.low %v849_v62, %v853_v4 }
 0x2a3   :  { %v717_v0 = vld [vmem:[#allocation8 + $0xaf8] sm:$0xff] }
 0x2a4   :  { %4065 = vmatpush1.bf16.msra.mxu0 %v5140_v18  ;;  %v841_v11 = vld [vmem:[#allocation8 + $0xed8] sm:$0xff]  ;;  %v5213_v17 = vcombine.high %v713_v10, %v717_v0  ;;  %v5212_v24 = vcombine.low %v713_v10, %v717_v0 }
 0x2a5   :  { %4106 = vmatpush1.bf16.msra.mxu1 %v5268_v19  ;;  %4066 = vmatprep.subr.bf16.mxu0 %v5133_v20  ;;  %v845_v12 = vld [vmem:[#allocation8 + $0xef8] sm:$0xff] }
 0x2a6   :  { %4107 = vmatprep.subr.bf16.mxu1 %v5261_v21  ;;  %v5341_v18 = vcombine.high %v841_v11, %v845_v12  ;;  %v705_v19 = vld [vmem:[#allocation8 + $0xa98] sm:$0xff]  ;;  %v5340_v27 = vcombine.low %v841_v11, %v845_v12  ;;  %v5555_v11 = vld [vmem:[%s6159_s5 + $0x60] sm:$0xff]  }
 0x2a7   :  { %v709_v20 = vld [vmem:[#allocation8 + $0xab8] sm:$0xff] }
 0x2a8   :  { %4067 = vmatpush1.bf16.msra.mxu0 %v5132_v35  ;;  %v833_v21 = vld [vmem:[#allocation8 + $0xe98] sm:$0xff]  ;;  %v5205_v28 = vcombine.high %v705_v19, %v709_v20  ;;  %v5204_v40 = vcombine.low %v705_v19, %v709_v20  ;;  %v5560_v19 = vld [vmem:[%s6159_s5 + $0xd8] sm:$0xff]  }
 0x2a9   :  { %4108 = vmatpush1.bf16.msra.mxu1 %v5260_v36  ;;  %4068 = vmatprep.subr.bf16.mxu0 %v5125_v37  ;;  %v837_v23 = vld [vmem:[#allocation8 + $0xeb8] sm:$0xff]  ;;  %v5561_v20 = vld [vmem:[%s6159_s5 + $0x18] sm:$0xff]  }
 0x2aa   :  { %4109 = vmatprep.subr.bf16.mxu1 %v5253_v25  ;;  %v5333_v35 = vcombine.high %v833_v21, %v837_v23  ;;  %v697_v36 = vld [vmem:[#allocation8 + $0xa58] sm:$0xff]  ;;  %v5332_v41 = vcombine.low %v833_v21, %v837_v23  ;;  %v5562_v21 = vld [vmem:[%s6159_s5 + $0x98] sm:$0xff]  }
 0x2ab   :  { %v701_v37 = vld [vmem:[#allocation8 + $0xa78] sm:$0xff] }
 0x2ac   :  { %4069 = vmatpush1.bf16.msra.mxu0 %v5124_v44  ;;  %v825_v25 = vld [vmem:[#allocation8 + $0xe58] sm:$0xff]  ;;  %v5197_v42 = vcombine.high %v697_v36, %v701_v37  ;;  %v5196_v47 = vcombine.low %v697_v36, %v701_v37 }
 0x2ad   :  { %4110 = vmatpush1.bf16.msra.mxu1 %v5252_v46  ;;  %4070 = vmatprep.subr.bf16.mxu0 %v5245_v51  ;;  %v829_v39 = vld [vmem:[#allocation8 + $0xe78] sm:$0xff] }
 0x2ae   :  { %4111 = vmatprep.subr.bf16.mxu1 %v5373_v30  ;;  %v5325_v44 = vcombine.high %v825_v25, %v829_v39  ;;  %v689_v46 = vld [vmem:[#allocation8 + $0xa18] sm:$0xff]  ;;  %v5324_v48 = vcombine.low %v825_v25, %v829_v39  ;;  %v5571_v39 = vld [vmem:[%s6159_s5 + $0x40] sm:$0xff]  }
 0x2af   :  { %v693_v51 = vld [vmem:[#allocation8 + $0xa38] sm:$0xff] }
 0x2b0   :  { %4071 = vmatpush2.bf16.msra.mxu0 %v5244_v26  ;;  %v817_v30 = vld [vmem:[#allocation8 + $0xe18] sm:$0xff]  ;;  %v5189_v26 = vcombine.high %v689_v46, %v693_v51 }
 0x2b1   :  { %4112 = vmatpush2.bf16.msra.mxu1 %v5372_v50  ;;  %4072 = vmatprep.subr.bf16.mxu0 %v5237_v33  ;;  %v821_v31 = vld [vmem:[#allocation8 + $0xe38] sm:$0xff]  ;;  %v3804_v33 = vadd.f32 %v5929_v2, %v3763_v59  ;;  %v5545_v2 = vld [vmem:[%s6159_s5 + $0x38] sm:$0xff]  }
 0x2b2   :  { %4113 = vmatprep.subr.bf16.mxu1 %v5365_v34  ;;  %v5317_v50 = vcombine.high %v817_v30, %v821_v31  ;;  %v5188_v34 = vcombine.low %v689_v46, %v693_v51  ;;  %v5316_v22 = vcombine.low %v817_v30, %v821_v31  ;;  %v5548_v3 = vld [vmem:[%s6159_s5 + $0xf0] sm:$0xff]   ;;  %v5551_v4 = vld [vmem:[%s6159_s5 + $0x68] sm:$0xff]   ;;  %v5575_v46 = vld [vmem:[%s6159_s5 + $0x178] sm:$0xff]   ;;  %v4138_v51 = vmax.f32 %v5926_v32, 0.0 }
 0x2b3   :  { %v4139_v38 = vmax.f32 %v3804_v33, 0.0  ;;  %v5549_v60 = vld [vmem:[%s6159_s5 + $0x30] sm:$0xff]   ;;  %v5554_v0 = vld [vmem:[%s6159_s5 + $0xa8] sm:$0xff]   ;;  %v5591_v30 = vld [vmem:[%s6159_s5 + $0x1f8] sm:$0xff]  }
 0x2b4   :  { %4073 = vmatpush2.bf16.msra.mxu0 %v5236_v55  ;;  %v5547_v55 = vld [vmem:[%s6159_s5 + $0x70] sm:$0xff]   ;;  %v5568_v36 = vld [vmem:[%s6159_s5 + $0xc8] sm:$0xff]   ;;  %v5592_v32 = vld [vmem:[%s6159_s5 + $0x1b8] sm:$0xff]  }
 0x2b5   :  { %4114 = vmatpush2.bf16.msra.mxu1 %v5364_v53  ;;  %4074 = vmatprep.subr.bf16.mxu0 %v5229_v56  ;;  %v4145_v53 = vpack.c.bf16 %v4137_v43, %v4137_v43  ;;  %v5563_v23 = vld [vmem:[%s6159_s5 + $0x50] sm:$0xff]   ;;  %v5569_v37 = vld [vmem:[%s6159_s5 + $0x8] sm:$0xff]   ;;  %v5597_v43 = vld [vmem:[%s6159_s5 + $0x1e0] sm:$0xff]  }
 0x2b6   :  { %4115 = vmatprep.subr.bf16.mxu1 %v5357_v57  ;;  %v4147_v57 = vpack.c.bf16 %v4139_v38, %v4139_v38  ;;  %v5570_v25 = vld [vmem:[%s6159_s5 + $0x88] sm:$0xff]   ;;  %v5577_v59 = vld [vmem:[%s6159_s5 + $0x170] sm:$0xff]   ;;  %v5582_v38 = vld [vmem:[%s6159_s5 + $0x120] sm:$0xff]  }
 0x2b7   :  { %v5594_v33 = vld [vmem:[%s6159_s5 + $0x1b0] sm:$0xff]  }
 0x2b8   :  { %4075 = vmatpush2.bf16.msra.mxu0 %v5228_v5 }
 0x2b9   :  { %4116 = vmatpush2.bf16.msra.mxu1 %v5356_v8  ;;  %4076 = vmatprep.subr.bf16.mxu0 %v5221_v63 }
 0x2ba   :  { %4117 = vmatprep.subr.bf16.mxu1 %v5349_v9  ;;  %v5553_v9 = vld [vmem:[%s6159_s5 + $0x28] sm:$0xff]  }
 0x2bc   :  { %4077 = vmatpush2.bf16.msra.mxu0 %v5220_v14  ;;  %v5556_v14 = vld [vmem:[%s6159_s5 + $0xe0] sm:$0xff]  }
 0x2bd   :  { %4118 = vmatpush2.bf16.msra.mxu1 %v5348_v15  ;;  %4078 = vmatprep.subr.bf16.mxu0 %v5213_v17  ;;  %v5557_v15 = vld [vmem:[%s6159_s5 + $0x20] sm:$0xff]  }
 0x2be   :  { %4119 = vmatprep.subr.bf16.mxu1 %v5341_v18  ;;  %v5558_v17 = vld [vmem:[%s6159_s5 + $0xa0] sm:$0xff]   ;;  %v5559_v18 = vld [vmem:[%s6159_s5 + $0x58] sm:$0xff]  }
 0x2c0   :  { %4079 = vmatpush2.bf16.msra.mxu0 %v5212_v24  ;;  %v5564_v24 = vld [vmem:[%s6159_s5 + $0xd0] sm:$0xff]  }
 0x2c1   :  { %4120 = vmatpush2.bf16.msra.mxu1 %v5340_v27  ;;  %4080 = vmatprep.subr.bf16.mxu0 %v5205_v28  ;;  %v5565_v27 = vld [vmem:[%s6159_s5 + $0x10] sm:$0xff]  }
 0x2c2   :  { %4121 = vmatprep.subr.bf16.mxu1 %v5333_v35  ;;  %v5566_v28 = vld [vmem:[%s6159_s5 + $0x90] sm:$0xff]   ;;  %v5567_v35 = vld [vmem:[%s6159_s5 + $0x48] sm:$0xff]  }
 0x2c4   :  { %4081 = vmatpush2.bf16.msra.mxu0 %v5204_v40  ;;  %v5572_v40 = vld [vmem:[%s6159_s5 + $0xc0] sm:$0xff]  }
 0x2c5   :  { %4122 = vmatpush2.bf16.msra.mxu1 %v5332_v41  ;;  %4082 = vmatprep.subr.bf16.mxu0 %v5197_v42  ;;  %v5573_v41 = vld [vmem:[%s6159_s5] sm:$0xff]   ;;  %v4136_v42 = vmax.f32 %v5900_v54, 0.0  ;;  %v5576_v54 = vld [vmem:[%s6159_s5 + $0x138] sm:$0xff]  }
 0x2c6   :  { %4123 = vmatprep.subr.bf16.mxu1 %v5325_v44  ;;  %v5574_v44 = vld [vmem:[%s6159_s5 + $0x80] sm:$0xff]  }
 0x2c7   :  { %v4144_v31 = vpack.c.bf16 %v4136_v42, %v4136_v42 }
 0x2c8   :  { %4083 = vmatpush2.bf16.msra.mxu0 %v5196_v47  ;;  %v4146_v47 = vpack.c.bf16 %v4138_v51, %v4138_v51 }
 0x2c9   :  { %4124 = vmatpush2.bf16.msra.mxu1 %v5324_v48  ;;  %4084 = vmatprep.subr.bf16.mxu0 %v5189_v26  ;;  %v5593_v48 = vld [vmem:[%s6159_s5 + $0x1f0] sm:$0xff]  }
 0x2ca   :  { %4125 = vmatprep.subr.bf16.mxu1 %v5317_v50  ;;  %v5578_v26 = vld [vmem:[%s6159_s5 + $0x130] sm:$0xff]   ;;  %v5579_v50 = vld [vmem:[%s6159_s5 + $0x168] sm:$0xff]  }
 0x2cc   :  { %4085 = vmatpush2.bf16.msra.mxu0 %v5188_v34  ;;  %v5595_v34 = vld [vmem:[%s6159_s5 + $0x1e8] sm:$0xff]  }
 0x2cd   :  { %4126 = vmatpush2.bf16.msra.mxu1 %v5316_v22  ;;  %5439 = vmatprep.subr.bf16.mxu0 %v5543_v52  ;;  %v5580_v22 = vld [vmem:[%s6159_s5 + $0x128] sm:$0xff]   ;;  %v5581_v52 = vld [vmem:[%s6159_s5 + $0x160] sm:$0xff]  }
 0x2ce   :  { %5461 = vmatprep.subr.bf16.mxu1 %v5544_v61  ;;  %v5596_v61 = vld [vmem:[%s6159_s5 + $0x1a8] sm:$0xff]  }
 0x2cf   :  { %v5950_v56 = vpop.f32.mrf.mxu0  ;;  %4087 = vmatmul.mubr.bf16.vlgmr.msra.gmra.mxu0 %v5870_v1  ;;  %v5550_v1 = vld [vmem:[%s6159_s5 + $0xb0] sm:$0xff]  }
 0x2d0   :  { %v5956_v58 = vpop.f32.mrf.mxu1  ;;  %4128 = vmatmul.mubr.bf16.vlgmr.msra.gmra.mxu1 %v5868_v6  ;;  %5440 = vmatpush3.bf16.msra.mxu0 %v5545_v2  ;;  %v5552_v6 = vld [vmem:[%s6159_s5 + $0xe8] sm:$0xff]   ;;  %v5583_v2 = vld [vmem:[%s6159_s5 + $0x158] sm:$0xff]  }
 0x2d1   :  { %4703 = vmatprep.mubr.bf16.mxu0 %v4145_v53  ;;  %5462 = vmatpush3.bf16.msra.mxu1 %v5546_v7  ;;  %v5962_v62 = vpop.f32.mrf.mxu0  ;;  %v5598_v7 = vld [vmem:[%s6159_s5 + $0x1a0] sm:$0xff]   ;;  %v5584_v53 = vld [vmem:[%s6159_s5 + $0x118] sm:$0xff]  }
 0x2d2   :  { %4743 = vmatprep.mubr.bf16.mxu1 %v4147_v57  ;;  %v5970_v5 = vpop.f32.mrf.mxu1  ;;  %5441 = vmatprep.subr.bf16.mxu0 %v5547_v55  ;;  %v5599_v55 = vld [vmem:[%s6159_s5 + $0x1d8] sm:$0xff]  }
 0x2d3   :  { %v3846_v8 = vpop.f32.mrf.mxu0  ;;  %5463 = vmatprep.subr.bf16.mxu1 %v5548_v3  ;;  %v5585_v3 = vld [vmem:[%s6159_s5 + $0x150] sm:$0xff]   ;;  %v5600_v57 = vld [vmem:[%s6159_s5 + $0x198] sm:$0xff]  }
 0x2d4   :  { %v3887_v63 = vpop.f32.mrf.mxu1  ;;  %5442 = vmatpush3.bf16.msra.mxu0 %v5549_v60  ;;  %v5586_v60 = vld [vmem:[%s6159_s5 + $0x110] sm:$0xff]  }
 0x2d5   :  { %5464 = vmatpush3.bf16.msra.mxu1 %v5550_v1  ;;  %v3847_v10 = vpop.f32.mrf.mxu0  ;;  %5443 = vmatprep.subr.bf16.mxu0 %v5551_v4  ;;  %v5587_v1 = vld [vmem:[%s6159_s5 + $0x148] sm:$0xff]   ;;  %v5611_v8 = vld [vmem:[#allocation10] sm:$0xff] }
 0x2d6   :  { %v3888_v12 = vpop.f32.mrf.mxu1  ;;  %5465 = vmatprep.subr.bf16.mxu1 %v5552_v6  ;;  %v5588_v4 = vld [vmem:[%s6159_s5 + $0x108] sm:$0xff]   ;;  %v5589_v6 = vld [vmem:[%s6159_s5 + $0x140] sm:$0xff]   ;;  %v899_v63 = vrot.slane %v5611_v8, %v115_v16  ;;  %v5601_v16 = vld [vmem:[%s6159_s5 + $0x1d0] sm:$0xff]  }
 0x2d7   :  { %v5590_v10 = vld [vmem:[%s6159_s5 + $0x100] sm:$0xff]  }
 0x2d8   :  { %5444 = vmatpush3.bf16.msra.mxu0 %v5553_v9  ;;  %v903_v9 = vrot.slane %v5611_v8, %v119_v45 }
 0x2d9   :  { %5466 = vmatpush3.bf16.msra.mxu1 %v5554_v0  ;;  %5445 = vmatprep.subr.bf16.mxu0 %v5555_v11  ;;  %v3843_v0 = vadd.f32 %v5950_v56, %v899_v63 }
 0x2da   :  { %5467 = vmatprep.subr.bf16.mxu1 %v5556_v14  ;;  %v3845_v11 = vadd.f32 %v5962_v62, %v903_v9 }
 0x2db   :  { %v3884_v12 = vadd.f32 %v5956_v58, %v3843_v0 }
 0x2dc   :  { %5446 = vmatpush3.bf16.msra.mxu0 %v5557_v15  ;;  %v3886_v45 = vadd.f32 %v5970_v5, %v3845_v11  ;;  %v5604_v5 = vld [vmem:[%s6159_s5 + $0x188] sm:$0xff]  }
 0x2dd   :  { %5468 = vmatpush3.bf16.msra.mxu1 %v5558_v17  ;;  %5447 = vmatprep.subr.bf16.mxu0 %v5559_v18  ;;  %v5602_v18 = vld [vmem:[%s6159_s5 + $0x190] sm:$0xff]  }
 0x2de   :  { %5469 = vmatprep.subr.bf16.mxu1 %v5560_v19 }
 0x2e0   :  { %5448 = vmatpush3.bf16.msra.mxu0 %v5561_v20 }
 0x2e1   :  { %5470 = vmatpush3.bf16.msra.mxu1 %v5562_v21  ;;  %5449 = vmatprep.subr.bf16.mxu0 %v5563_v23  ;;  %v5603_v21 = vld [vmem:[%s6159_s5 + $0x1c8] sm:$0xff]  }
 0x2e2   :  { %5471 = vmatprep.subr.bf16.mxu1 %v5564_v24 }
 0x2e4   :  { %5450 = vmatpush3.bf16.msra.mxu0 %v5565_v27 }
 0x2e5   :  { %5472 = vmatpush3.bf16.msra.mxu1 %v5566_v28  ;;  %5451 = vmatprep.subr.bf16.mxu0 %v5567_v35 }
 0x2e6   :  { %5473 = vmatprep.subr.bf16.mxu1 %v5568_v36 }
 0x2e8   :  { %5452 = vmatpush3.bf16.msra.mxu0 %v5569_v37  ;;  %v5605_v37 = vld [vmem:[%s6159_s5 + $0x1c0] sm:$0xff]  }
 0x2e9   :  { %5474 = vmatpush3.bf16.msra.mxu1 %v5570_v25  ;;  %5453 = vmatprep.subr.bf16.mxu0 %v5571_v39  ;;  %v5606_v39 = vld [vmem:[%s6159_s5 + $0x180] sm:$0xff]  }
 0x2ea   :  { %5475 = vmatprep.subr.bf16.mxu1 %v5572_v40 }
 0x2ec   :  { %5454 = vmatpush3.bf16.msra.mxu0 %v5573_v41 }
 0x2ed   :  { %5476 = vmatpush3.bf16.msra.mxu1 %v5574_v44  ;;  %5483 = vmatprep.subr.bf16.mxu0 %v5575_v46 }
 0x2ee   :  { %5505 = vmatprep.subr.bf16.mxu1 %v5591_v30 }
 0x2ef   :  { %4704 = vmatmul.mubr.bf16.vlgmr.msra.gmra.mxu0 %v4144_v31 }
 0x2f0   :  { %4744 = vmatmul.mubr.bf16.vlgmr.msra.gmra.mxu1 %v4146_v47  ;;  %5484 = vmatpush3.bf16.msra.mxu0 %v5576_v54 }
 0x2f1   :  { %5485 = vmatprep.subr.bf16.mxu0 %v5577_v59  ;;  %5506 = vmatpush3.bf16.msra.mxu1 %v5592_v32  ;;  %v907_v59 = vrot.slane %v5611_v8, %v123_v13  ;;  %v911_v32 = vrot.slane %v5611_v8, %v127_v49 }
 0x2f2   :  { %5507 = vmatprep.subr.bf16.mxu1 %v5593_v48 }
 0x2f4   :  { %5486 = vmatpush3.bf16.msra.mxu0 %v5578_v26 }
 0x2f5   :  { %5487 = vmatprep.subr.bf16.mxu0 %v5579_v50  ;;  %5508 = vmatpush3.bf16.msra.mxu1 %v5594_v33 }
 0x2f6   :  { %5509 = vmatprep.subr.bf16.mxu1 %v5595_v34 }
 0x2f8   :  { %5488 = vmatpush3.bf16.msra.mxu0 %v5580_v22 }
 0x2f9   :  { %5489 = vmatprep.subr.bf16.mxu0 %v5581_v52  ;;  %5510 = vmatpush3.bf16.msra.mxu1 %v5596_v61 }
 0x2fa   :  { %5511 = vmatprep.subr.bf16.mxu1 %v5597_v43 }
 0x2fc   :  { %5490 = vmatpush3.bf16.msra.mxu0 %v5582_v38 }
 0x2fd   :  { %5491 = vmatprep.subr.bf16.mxu0 %v5583_v2  ;;  %5512 = vmatpush3.bf16.msra.mxu1 %v5598_v7 }
 0x2fe   :  { %5513 = vmatprep.subr.bf16.mxu1 %v5599_v55 }
 0x300   :  { %5492 = vmatpush3.bf16.msra.mxu0 %v5584_v53 }
 0x301   :  { %5493 = vmatprep.subr.bf16.mxu0 %v5585_v3  ;;  %5514 = vmatpush3.bf16.msra.mxu1 %v5600_v57 }
 0x302   :  { %5515 = vmatprep.subr.bf16.mxu1 %v5601_v16 }
 0x304   :  { %5494 = vmatpush3.bf16.msra.mxu0 %v5586_v60 }
 0x305   :  { %5495 = vmatprep.subr.bf16.mxu0 %v5587_v1  ;;  %5516 = vmatpush3.bf16.msra.mxu1 %v5602_v18 }
 0x306   :  { %5517 = vmatprep.subr.bf16.mxu1 %v5603_v21 }
 0x308   :  { %5496 = vmatpush3.bf16.msra.mxu0 %v5588_v4  ;;  %v5374_v4 = vld [vmem:[#allocation2] ss:$0 sm:$0xff] }
 0x309   :  { %5497 = vmatprep.subr.bf16.mxu0 %v5589_v6  ;;  %5518 = vmatpush3.bf16.msra.mxu1 %v5604_v5 }
 0x30a   :  { %5519 = vmatprep.subr.bf16.mxu1 %v5605_v37 }
 0x30c   :  { %5498 = vmatpush3.bf16.msra.mxu0 %v5590_v10 }
 0x30d   :  { %5520 = vmatpush3.bf16.msra.mxu1 %v5606_v39 }
 0x30f   :  { %v3924_v14 = vpop.f32.mrf.mxu0 }
 0x310   :  { %v3925_v15 = vadd.f32 %v3924_v14, %v3884_v12  ;;  %v3965_v17 = vpop.f32.mrf.mxu1 }
 0x311   :  { %v3926_v19 = vpop.f32.mrf.mxu0 }
 0x312   :  { %v3966_v56 = vadd.f32 %v3965_v17, %v3925_v15  ;;  %v3927_v62 = vadd.f32 %v3926_v19, %v3886_v45  ;;  %v3967_v20 = vpop.f32.mrf.mxu1 }
 0x313   :  { %v3928_v58 = vpop.f32.mrf.mxu0 }
 0x314   :  { %v3968_v23 = vadd.f32 %v3967_v20, %v3927_v62  ;;  %v3969_v24 = vpop.f32.mrf.mxu1  ;;  %v4140_v27 = vmax.f32 %v3966_v56, 0.0 }
 0x315   :  { %v3929_v28 = vpop.f32.mrf.mxu0 }
 0x316   :  { %v4141_v35 = vmax.f32 %v3968_v23, 0.0  ;;  %v3970_v36 = vpop.f32.mrf.mxu1  ;;  %v4148_v40 = vpack.c.bf16 %v4140_v27, %v4140_v27 }
 0x318   :  { %v4149_v25 = vpack.c.bf16 %v4141_v35, %v4141_v35 }
 0x31a   :  { %4783 = vmatprep.mubr.bf16.mxu0 %v4149_v25 }
 0x31b   :  { %4784 = vmatmul.mubr.bf16.vlgmr.msra.gmra.mxu0 %v4148_v40 }
 0x34f   :  { %v4006_v41 = vpop.f32.mrf.mxu0 }
 0x350   :  { %v4047_v42 = vpop.f32.mrf.mxu1  ;;  %v4007_v47 = vadd.f32 %v4006_v41, %v907_v59 }
 0x351   :  { %v4008_v44 = vpop.f32.mrf.mxu0 }
 0x352   :  { %v4049_v46 = vpop.f32.mrf.mxu1  ;;  %v4009_v48 = vadd.f32 %v4008_v44, %v911_v32  ;;  %v4048_v26 = vadd.f32 %v4047_v42, %v4007_v47 }
 0x353   :  { %v4010_v51 = vpop.f32.mrf.mxu0 }
 0x354   :  { %v4051_v30 = vpop.f32.mrf.mxu1  ;;  %v4050_v33 = vadd.f32 %v4049_v46, %v4009_v48 }
 0x355   :  { %v4011_v54 = vpop.f32.mrf.mxu0 }
 0x356   :  { %v4052_v31 = vpop.f32.mrf.mxu1 }
 0x38f   :  { %v4088_v50 = vpop.f32.mrf.mxu0 }
 0x390   :  { %v4089_v34 = vadd.f32 %v4088_v50, %v4048_v26  ;;  %v4129_v22 = vpop.f32.mrf.mxu1 }
 0x391   :  { %v4090_v52 = vpop.f32.mrf.mxu0 }
 0x392   :  { %v4130_v61 = vadd.f32 %v4129_v22, %v4089_v34  ;;  %v4091_v43 = vadd.f32 %v4090_v52, %v4050_v33  ;;  %v4131_v38 = vpop.f32.mrf.mxu1 }
 0x393   :  { %v4092_v2 = vpop.f32.mrf.mxu0 }
 0x394   :  { %v4132_v7 = vadd.f32 %v4131_v38, %v4091_v43  ;;  %v4133_v55 = vpop.f32.mrf.mxu1  ;;  %v4142_v53 = vmax.f32 %v4130_v61, 0.0 }
 0x395   :  { %v4093_v3 = vpop.f32.mrf.mxu0 }
 0x396   :  { %v4143_v13 = vmax.f32 %v4132_v7, 0.0  ;;  %v4134_v57 = vpop.f32.mrf.mxu1  ;;  %v4150_v49 = vpack.c.bf16 %v4142_v53, %v4142_v53 }
 0x398   :  { %v4151_v29 = vpack.c.bf16 %v4143_v13, %v4143_v13 }
 0x39a   :  { %4823 = vmatprep.mubr.bf16.mxu1 %v4151_v29 }
 0x39b   :  { %4824 = vmatmul.mubr.bf16.vlgmr.msra.gmra.mxu1 %v4150_v49 }
 0x3af   :  { %v5455_v60 = vpop.f32.mrf.mxu0 }
 0x3b0   :  { %v5477_v1 = vpop.f32.mrf.mxu1 }
 0x3b1   :  { %v5456_v6 = vpop.f32.mrf.mxu0 }
 0x3b2   :  { %v5457_v8 = vadd.f32 %v5456_v6, %v5455_v60  ;;  %v5478_v63 = vpop.f32.mrf.mxu1 }
 0x3b3   :  { %v5479_v9 = vadd.f32 %v5478_v63, %v5477_v1  ;;  %v5458_v10 = vpop.f32.mrf.mxu0 }
 0x3b4   :  { %v4706_v0 = vadd.f32 %v5457_v8, %v5374_v4  ;;  %v5480_v11 = vpop.f32.mrf.mxu1 }
 0x3b5   :  { %v5459_v12 = vpop.f32.mrf.mxu0 }
 0x3b6   :  { %v4746_v14 = vadd.f32 %v5479_v9, %v4706_v0  ;;  %v5481_v16 = vpop.f32.mrf.mxu1 }
 0x3db   :  { %v5499_v45 = vpop.f32.mrf.mxu0 }
 0x3dd   :  { %v5500_v15 = vpop.f32.mrf.mxu0 }
 0x3de   :  { %v5501_v17 = vadd.f32 %v5500_v15, %v5499_v45 }
 0x3df   :  { %v5502_v18 = vpop.f32.mrf.mxu0 }
 0x3e0   :  { %v4786_v19 = vadd.f32 %v5501_v17, %v4746_v14 }
 0x3e1   :  { %v5503_v56 = vpop.f32.mrf.mxu0 }
 0x45b   :  { %v5521_v62 = vpop.f32.mrf.mxu1 }
 0x45d   :  { %v5522_v20 = vpop.f32.mrf.mxu1 }
 0x45e   :  { %v5523_v58 = vadd.f32 %v5522_v20, %v5521_v62 }
 0x45f   :  { %v5524_v21 = vpop.f32.mrf.mxu1 }
 0x460   :  { %v4826_v23 = vadd.f32 %v5523_v58, %v4786_v19 }
 0x461   :  { %v5525_v24 = vpop.f32.mrf.mxu1 }
 0x462   :  { %v4831_v5 = vsub.f32 0.0, %v4826_v23 }
 0x464   :  { %v4832_v27 = vmul.f32 1.442695, %v4831_v5 }
 0x466   :  { %5607 = vpow2.f32 %v4832_v27 }
 0x473   :  { %v5608_v28 = vpop.eup %5607 }
 0x474   :  { %v4834_v35 = vadd.f32 1.0, %v5608_v28 }
 0x476   :  { %5609 = vrcp.f32 %v4834_v35 }
 0x483   :  { %v5610_v36 = vpop.eup %5609 }
 0x484   :  { %4838 = vst.msk [vmem:[%s6161_s7] sm:$0xff] %vm4837_vm2, %v5610_v36 }
 0x485   :  { %4843 = vsyncpa [#allocation4], 1 }
 0x486   :  { %4844 = vsyncpa [#allocation6], 1 }
 0x487   :  { %4845 = vsyncpa [#allocation9], 1 }

</bundles_post_ra>
